<compile_context>
chip_gen: v5e
topology: v5e:2x2
jax: 0.10.0
libtpu: 0.0.40
codegen_flags: <defaults>
</compile_context>

<pallas_src>
import jax
import jax.numpy as jnp
from jax.experimental import pallas as pl
from jax.experimental.pallas import tpu as pltpu


def make_base_model_kernel(T):
    def kernel(x_ref, keep_ref, invc_ref, w1_ref, b1_ref, w2_ref, b2_ref, o_ref):
        MT, _ = x_ref.shape
        H = w1_ref.shape[1]
        bblk = MT // T

        # pre_net + ReLU over the whole (block_b*T, D) slab.  x arrives as f32;
        # the bf16 cast happens here (VPU), accumulation stays f32 on the MXU.
        x_bf = x_ref[...].astype(jnp.bfloat16)
        h = jnp.dot(x_bf, w1_ref[...], preferred_element_type=jnp.float32)
        h = jnp.maximum(h + b1_ref[...], 0.0)                   # (MT, H) f32

        # masked mean over time: elementwise 0/1 mask, per-sample segment sum,
        # exact f32 1/count scale (precomputed in the wrapper).
        hm = h * keep_ref[...]                                   # (MT, H)
        if T % 8 == 0:
            # (MT, H) -> (bblk, T, H) is a pure re-index of (8,128) f32 tiles;
            # the reduce over axis=1 is a sublane reduce (XLU).
            pooled = jnp.sum(hm.reshape(bblk, T, H), axis=1)     # (bblk, H)
        else:
            # fallback for non-tile-aligned T: block-diagonal selector built
            # from iota (no HBM traffic), pooled via one small MXU matmul.
            row = jax.lax.broadcasted_iota(jnp.int32, (bblk, MT), 0)
            col = jax.lax.broadcasted_iota(jnp.int32, (bblk, MT), 1)
            sel = ((col >= row * T) & (col < (row + 1) * T)).astype(jnp.float32)
            pooled = jnp.dot(sel, hm, preferred_element_type=jnp.float32)
        pooled = pooled * invc_ref[...]                          # (bblk, H)*(bblk,1)

        # post_net against lane-dense (H, 128)-padded W2 -> (bblk, n_pad) tile.
        out = jnp.dot(pooled, w2_ref[...], preferred_element_type=jnp.float32)
        o_ref[...] = (out + b2_ref[...]).astype(o_ref.dtype)

    return kernel


def _pick_block_b(B, T):
    """Rows-per-block so M = block_b*T ~ 256, multiple of 8, divisor of B,
    and >= 2 grid blocks when B allows (v7x megacore)."""
    if B <= 8 or B % 8 != 0:
        return B                       # single block; block dims == full dims
    cap = min(B // 2, max(8, 256 // max(T, 1)))
    cap = max(8, (cap // 8) * 8)
    best = 8
    for cand in range(16, cap + 1, 8):
        if B % cand == 0:
            best = cand
    return best


def base_model_forward(x, padding_mask, w1, b1, w2, b2, *, block_b=None):
    """x: (B, T, D) f32, padding_mask: (B, T) with 1 = padded position."""
    B, T, D = x.shape
    H = w1.shape[1]
    O = w2.shape[1]

    if block_b is None:
        block_b = _pick_block_b(B, T)
    assert B % block_b == 0, "B must be divisible by block_b"
    nblk = B // block_b

    # 0/1 keep vector and exact f32 1/count (guard count==0; the PyTorch
    # reference would produce NaN there — intentional divergence).
    keep = 1.0 - padding_mask.astype(jnp.float32)                # (B, T)
    count = jnp.maximum(keep.sum(axis=-1, keepdims=True), 1.0)   # (B, 1)
    inv_count = 1.0 / count                                      # (B, 1) f32
    keep_flat = keep.reshape(B * T, 1)                           # (B*T, 1)

    # flatten x for a sublane/lane-dense block and a fat matmul M (free reshape)
    x_flat = x.reshape(B * T, D)                                 # stays f32

    # lane-dense padding of post_net to a multiple of 128 lanes
    n_pad = max(128, ((O + 127) // 128) * 128)
    w2_pad = jnp.zeros((H, n_pad), jnp.float32).at[:, :O].set(w2)
    b2_pad = jnp.zeros((1, n_pad), jnp.float32).at[:, :O].set(b2.reshape(1, O))

    # W1 pre-cast once (reused across all grid steps); b1 as a (1, H) row
    w1_bf = w1.astype(jnp.bfloat16)
    b1_2d = b1.reshape(1, H).astype(jnp.float32)

    out = pl.pallas_call(
        make_base_model_kernel(T),
        out_shape=jax.ShapeDtypeStruct((B, n_pad), jnp.float32),
        grid_spec=pltpu.PrefetchScalarGridSpec(
            num_scalar_prefetch=0,
            grid=(nblk,),
            in_specs=[
                pl.BlockSpec((block_b * T, D), lambda g: (g, 0)),   # x (f32)
                pl.BlockSpec((block_b * T, 1), lambda g: (g, 0)),   # keep 0/1
                pl.BlockSpec((block_b, 1), lambda g: (g, 0)),       # 1/count
                pl.BlockSpec((D, H), lambda g: (0, 0)),             # W1 (bf16)
                pl.BlockSpec((1, H), lambda g: (0, 0)),             # b1
                pl.BlockSpec((H, n_pad), lambda g: (0, 0)),         # W2 padded
                pl.BlockSpec((1, n_pad), lambda g: (0, 0)),         # b2 padded
            ],
            out_specs=pl.BlockSpec((block_b, n_pad), lambda g: (g, 0)),
        ),
        compiler_params=pltpu.CompilerParams(
            dimension_semantics=("parallel",)),
    )(x_flat, keep_flat, inv_count, w1_bf, b1_2d, w2_pad, b2_pad)

    return out[:, :O]


def reference_forward(x, padding_mask, w1, b1, w2, b2, *, bf16_matmul=False):
    """Pure-JAX reference matching the PyTorch module."""
    if bf16_matmul:
        h = jnp.einsum("btd,dh->bth", x.astype(jnp.bfloat16),
                       w1.astype(jnp.bfloat16),
                       preferred_element_type=jnp.float32) + b1
    else:
        h = jnp.einsum("btd,dh->bth", x, w1) + b1
    h = jnp.maximum(h, 0.0)
    keep = 1.0 - padding_mask.astype(jnp.float32)                # (B, T)
    h = h * keep[:, :, None]
    pooled = h.sum(axis=1) / keep.sum(axis=1, keepdims=True)
    return jnp.einsum("bh,ho->bo", pooled, w2) + b2


if __name__ == "__main__":
    B, T, D, H, O = 16, 8, 768, 256, 4

    key = jax.random.PRNGKey(0)
    kx, kw1, kb1, kw2, kb2 = jax.random.split(key, 5)

    x = jax.random.normal(kx, (B, T, D), dtype=jnp.float32)

    # deterministic "padding": valid lengths cycle through 1..T-1; 1 = padded
    lengths = (jnp.arange(B, dtype=jnp.int32) % (T - 1)) + 1
    padding_mask = (jnp.arange(T)[None, :] >= lengths[:, None]).astype(jnp.int32)

    # deterministic synthetic parameters (Linear shapes from __init__)
    w1 = jax.random.normal(kw1, (D, H), dtype=jnp.float32) * (1.0 / jnp.sqrt(D))
    b1 = jax.random.normal(kb1, (H,), dtype=jnp.float32) * 0.01
    w2 = jax.random.normal(kw2, (H, O), dtype=jnp.float32) * (1.0 / jnp.sqrt(H))
    b2 = jax.random.normal(kb2, (O,), dtype=jnp.float32) * 0.01

    out = base_model_forward(x, padding_mask, w1, b1, w2, b2)
    out = jax.block_until_ready(out)
    assert out.shape == (B, O)

    # tight check vs. a reference using the same bf16 pre_net operands
    ref_bf16 = reference_forward(x, padding_mask, w1, b1, w2, b2, bf16_matmul=True)
    assert jnp.allclose(out, ref_bf16, atol=2e-3, rtol=2e-3), (out, ref_bf16)

    # semantic check vs. the pure-f32 PyTorch-equivalent reference
    ref_f32 = reference_forward(x, padding_mask, w1, b1, w2, b2)
    assert jnp.allclose(out, ref_f32, atol=2e-2, rtol=2e-2), (out, ref_f32)

    print("KERNEL_OK")
</pallas_src>

<mosaic_0001>
module attributes {stable_mosaic.version = 11 : i64} {
  func.func @kernel(%arg0: i32, %arg1: memref<64x768xf32, #tpu.memory_space<vmem>>, %arg2: memref<64x1xf32, #tpu.memory_space<vmem>>, %arg3: memref<8x1xf32, #tpu.memory_space<vmem>>, %arg4: memref<768x256xbf16, #tpu.memory_space<vmem>>, %arg5: memref<1x256xf32, #tpu.memory_space<vmem>>, %arg6: memref<256x128xf32, #tpu.memory_space<vmem>>, %arg7: memref<1x128xf32, #tpu.memory_space<vmem>>, %arg8: memref<8x128xf32, #tpu.memory_space<vmem>>) attributes {dimension_semantics = [#tpu.dimension_semantics<parallel>], iteration_bounds = array<i64: 2>, scalar_prefetch = 0 : i64, scratch_operands = 0 : i64, tpu.core_type = #tpu.core_type<tc>, window_params = [{transform_indices = @transform_0, window_bounds = array<i64: 64, 768>}, {transform_indices = @transform_1, window_bounds = array<i64: 64, 1>}, {transform_indices = @transform_2, window_bounds = array<i64: 8, 1>}, {pipeline_mode = #tpu.pipeline_mode<synchronous>, transform_indices = @transform_3, window_bounds = array<i64: 768, 256>}, {pipeline_mode = #tpu.pipeline_mode<synchronous>, transform_indices = @transform_4, window_bounds = array<i64: 1, 256>}, {pipeline_mode = #tpu.pipeline_mode<synchronous>, transform_indices = @transform_5, window_bounds = array<i64: 256, 128>}, {pipeline_mode = #tpu.pipeline_mode<synchronous>, transform_indices = @transform_6, window_bounds = array<i64: 1, 128>}, {transform_indices = @transform_7, window_bounds = array<i64: 8, 128>}]} {
    %c0 = arith.constant 0 : index
    %c0_0 = arith.constant 0 : index
    %0 = vector.load %arg1[%c0, %c0_0] : memref<64x768xf32, #tpu.memory_space<vmem>>, vector<64x768xf32>
    %1 = arith.truncf %0 : vector<64x768xf32> to vector<64x768xbf16>
    %c0_1 = arith.constant 0 : index
    %c0_2 = arith.constant 0 : index
    %2 = vector.load %arg4[%c0_1, %c0_2] : memref<768x256xbf16, #tpu.memory_space<vmem>>, vector<768x256xbf16>
    %cst = arith.constant dense<0.000000e+00> : vector<64x256xf32>
    %3 = tpu.matmul %1, %2, %cst {dimension_numbers = #tpu.dot_dimension_numbers<[1], [0], [0], [1], [0, 0, 1, 1], [], []>} : vector<64x768xbf16>, vector<768x256xbf16>, vector<64x256xf32> -> vector<64x256xf32>
    %c0_3 = arith.constant 0 : index
    %c0_4 = arith.constant 0 : index
    %4 = vector.load %arg5[%c0_3, %c0_4] : memref<1x256xf32, #tpu.memory_space<vmem>>, vector<1x256xf32>
    %5 = vector.broadcast %4 : vector<1x256xf32> to vector<64x256xf32>
    %6 = arith.addf %3, %5 : vector<64x256xf32>
    %cst_5 = arith.constant 0.000000e+00 : f32
    %7 = vector.broadcast %cst_5 : f32 to vector<64x256xf32>
    %8 = arith.maximumf %6, %7 : vector<64x256xf32>
    %c0_6 = arith.constant 0 : index
    %c0_7 = arith.constant 0 : index
    %9 = vector.load %arg2[%c0_6, %c0_7] : memref<64x1xf32, #tpu.memory_space<vmem>>, vector<64x1xf32>
    %10 = vector.broadcast %9 : vector<64x1xf32> to vector<64x256xf32>
    %11 = arith.mulf %8, %10 : vector<64x256xf32>
    %12 = vector.shape_cast %11 : vector<64x256xf32> to vector<8x8x256xf32>
    %cst_8 = arith.constant dense<0.000000e+00> : vector<8x256xf32>
    %13 = vector.multi_reduction <add>, %12, %cst_8 [1] : vector<8x8x256xf32> to vector<8x256xf32>
    %c0_9 = arith.constant 0 : index
    %c0_10 = arith.constant 0 : index
    %14 = vector.load %arg3[%c0_9, %c0_10] : memref<8x1xf32, #tpu.memory_space<vmem>>, vector<8x1xf32>
    %15 = vector.broadcast %14 : vector<8x1xf32> to vector<8x256xf32>
    %16 = arith.mulf %13, %15 : vector<8x256xf32>
    %c0_11 = arith.constant 0 : index
    %c0_12 = arith.constant 0 : index
    %17 = vector.load %arg6[%c0_11, %c0_12] : memref<256x128xf32, #tpu.memory_space<vmem>>, vector<256x128xf32>
    %cst_13 = arith.constant dense<0.000000e+00> : vector<8x128xf32>
    %18 = tpu.matmul %16, %17, %cst_13 {dimension_numbers = #tpu.dot_dimension_numbers<[1], [0], [0], [1], [0, 0, 1, 1], [], []>} : vector<8x256xf32>, vector<256x128xf32>, vector<8x128xf32> -> vector<8x128xf32>
    %c0_14 = arith.constant 0 : index
    %c0_15 = arith.constant 0 : index
    %19 = vector.load %arg7[%c0_14, %c0_15] : memref<1x128xf32, #tpu.memory_space<vmem>>, vector<1x128xf32>
    %20 = vector.broadcast %19 : vector<1x128xf32> to vector<8x128xf32>
    %21 = arith.addf %18, %20 : vector<8x128xf32>
    %c0_16 = arith.constant 0 : index
    %c0_17 = arith.constant 0 : index
    %22 = vector.load %arg8[%c0_16, %c0_17] : memref<8x128xf32, #tpu.memory_space<vmem>>, vector<8x128xf32>
    tpu.vector_store %arg8[%c0_16, %c0_17], %21 {strides = array<i32>} : memref<8x128xf32, #tpu.memory_space<vmem>>, vector<8x128xf32>,
    return
  }
  func.func @transform_0(%arg0: i32) -> (i32, i32) {
    %c0_i32 = arith.constant 0 : i32
    %c0_i32_0 = arith.constant 0 : i32
    return %arg0, %c0_i32 : i32, i32
  }
  func.func @transform_1(%arg0: i32) -> (i32, i32) {
    %c0_i32 = arith.constant 0 : i32
    %c0_i32_0 = arith.constant 0 : i32
    return %arg0, %c0_i32 : i32, i32
  }
  func.func @transform_2(%arg0: i32) -> (i32, i32) {
    %c0_i32 = arith.constant 0 : i32
    %c0_i32_0 = arith.constant 0 : i32
    return %arg0, %c0_i32 : i32, i32
  }
  func.func @transform_3(%arg0: i32) -> (i32, i32) {
    %c0_i32 = arith.constant 0 : i32
    %c0_i32_0 = arith.constant 0 : i32
    %c0_i32_1 = arith.constant 0 : i32
    return %c0_i32, %c0_i32_0 : i32, i32
  }
  func.func @transform_4(%arg0: i32) -> (i32, i32) {
    %c0_i32 = arith.constant 0 : i32
    %c0_i32_0 = arith.constant 0 : i32
    %c0_i32_1 = arith.constant 0 : i32
    return %c0_i32, %c0_i32_0 : i32, i32
  }
  func.func @transform_5(%arg0: i32) -> (i32, i32) {
    %c0_i32 = arith.constant 0 : i32
    %c0_i32_0 = arith.constant 0 : i32
    %c0_i32_1 = arith.constant 0 : i32
    return %c0_i32, %c0_i32_0 : i32, i32
  }
  func.func @transform_6(%arg0: i32) -> (i32, i32) {
    %c0_i32 = arith.constant 0 : i32
    %c0_i32_0 = arith.constant 0 : i32
    %c0_i32_1 = arith.constant 0 : i32
    return %c0_i32, %c0_i32_0 : i32, i32
  }
  func.func @transform_7(%arg0: i32) -> (i32, i32) {
    %c0_i32 = arith.constant 0 : i32
    %c0_i32_0 = arith.constant 0 : i32
    return %arg0, %c0_i32 : i32, i32
  }
}

</mosaic_0001>

<bundles_post_ra>
// kernel: tpu_custom_call.1
= control target key start
LH: loop header
LB: loop body
LE: loop exit
PB: predicated region body
PF: predicated region fallthrough
CT: control target
= control target key end

     0   :  { %s3132_s0 = inlined_call_operand.hbm [shape: f32[128,768], index: 0, kind: input, shape index: {}]   ;;  %s3133_s1 = inlined_call_operand.vmem [shape: f32[128,1], index: 1, kind: input, shape index: {}]   ;;  %s3134_s2 = inlined_call_operand.vmem [shape: f32[16,1], index: 2, kind: input, shape index: {}]   ;;  %s3135_s3 = inlined_call_operand.hbm [shape: bf16[768,256], index: 3, kind: input, shape index: {}]   ;;  %s3136_s4 = inlined_call_operand.vmem [shape: f32[1,256], index: 4, kind: input, shape index: {}]   ;;  %s3137_s5 = inlined_call_operand.hbm [shape: f32[256,128], index: 5, kind: input, shape index: {}]   ;;  %s3138_s6 = inlined_call_operand.vmem [shape: f32[1,128], index: 6, kind: input, shape index: {}]   ;;  %s3139_s7 = inlined_call_operand.hbm [shape: f32[16,128], index: 7, kind: output, shape index: {}]  }
   0x1   :  { %3140 = sst [smem:[#allocation13_spill]] %s3135_s3 }
   0x2   :  { %3141 = sst [smem:[#allocation14_spill]] %s3137_s5 }
   0x3   :  { %12 = vsyncpa [#allocation3], 0 }
   0x4   :  { %14 = vsyncpa [#allocation3 + $0x1], 0 }
   0x5   :  { %15 = vsyncpa [#allocation6], 0 }
   0x6   :  { %16 = vsyncpa [#allocation4], 0 }
   0x7   :  { %18 = vsyncpa [#allocation4 + $0x1], 0  ;;  %s2633_s24 = smov 0   ;;  %s2635_s25 = smov 0  }
   0x8   :  { %s2637_s26 = smov 0   ;;  %s2639_s27 = smov 0  }
   0x9 LB: > { %s2654_s28 = sadd.s32 4294967295, %s2584_s27   ;;  %s1846_s29 = sadd.s32 4294967294, %s2584_s27   ;;  %s2584_s27 = sphi %s2639_s27, %s3155_s27   ;;  %s2580_s26 = sphi %s2637_s26, %s3154_s26   ;;  %s2576_s25 = sphi %s2635_s25, %s3153_s25   ;;  %s2572_s24 = sphi %s2633_s24, %s3152_s24  }
   0xa   : > { %p44_p0 = scmp.ne.s32.totalorder %s2576_s25, %s2572_s24  ;;  %p45_p1 = scmp.eq.s32.totalorder %s2654_s28, 0 }
   0xb   : > { %p204_p2 = scmp.eq.s32.totalorder %s2654_s28, 1  ;;  %p210_p3 = scmp.eq.s32.totalorder %s1846_s29, 1 }
   0xc   : > { %p2663_p4 = por %p45_p1, %p44_p0  ;;  %p1847_p5 = scmp.ge.s32.totalorder %s2584_s27, 1 }
   0xd   : > { %p2668_p6 = por %p210_p3, %p44_p0  ;;  %p217_p7 = scmp.lt.s32.totalorder %s2584_s27, 3 }
   0xe   : > { %s3144_s3 = sld [smem:[#allocation13_spill]]  ;;  %s2586_s13 = smov [#allocation5]  }
   0xf   : > { %p2676_p8 = pnand %p1847_p5, %p217_p7  ;;  %s230_s14 = sshll.u32 %s2586_s13, 4  ;;  %s231_s14 = int_to_ptr.vmem [resolvable:$true] %s230_s14 }
  0x10   : > { %s3146_s5 = sld [smem:[#allocation14_spill]]  ;;  %s2587_s18 = smov 128  }
  0x11   : > { %p2360_p9 = pneg %p2676_p8  ;;  %s2588_s19 = smov 8  }
  0x12   : > { %s2589_s20 = smov [#allocation7]   ;;  %s2689_s22 = sadd.s32 1, %s2584_s27  }
  0x13   : > { %p2361_p10 = pnand %p2360_p9, %p45_p1  ;;  %s247_s21 = sshll.u32 %s2589_s20, 4  ;;  %s248_s21 = int_to_ptr.vmem [resolvable:$true] %s247_s21 }
  0x14   : > { %s228_s11 = sshll.u32 %s3144_s3, 4  ;;  %s31_s23 = sadd.s32 1, %s2580_s26  ;;  %s229_s11 = int_to_ptr.hbm [resolvable:$true] %s228_s11 }
  0x15   : > { %2363 = dma.hbm_to_vmem [thread:$0]  (!%p2361_p10), %s229_s11, 12288, %s231_s14, [#allocation6], %s2587_s18, %s2587_s18, %s2588_s19  }
  0x16   : > { %s245_s17 = sshll.u32 %s3146_s5, 4  ;;  %s28_s29 = ssub.s32 %s2584_s27, %s2689_s22  ;;  %s246_s17 = int_to_ptr.hbm [resolvable:$true] %s245_s17 }
  0x17   : > { %2366 = dma.hbm_to_vmem [thread:$0]  (!%p2361_p10), %s246_s17, 4096, %s248_s21, [#allocation6], %s2587_s18, %s2587_s18, %s2588_s19  }
  0x18   : > { %p38_p12 = scmp.ne.s32.totalorder %s2580_s26, %s2576_s25  ;;  %p29_p13 = scmp.eq.s32.totalorder %s28_s29, 0 }
  0x19   : > { %p39_p0 = scmp.eq.s32.totalorder %s2584_s27, 0  ;;  %p2377_p5 = scmp.lt.s32.totalorder %s2584_s27, 2 }
  0x1a   : > { %p2699_p3 = por %p204_p2, %p38_p12  ;;  %s264_s11 = sand.u32 1, %s2580_s26  }
  0x1b   : > { %s2705_s10 = scalar_select %p29_p13, %s2580_s26, %s31_s23  }
  0x1c   : > { %p40_p7 = por %p39_p0, %p38_p12  ;;  %s2345_s13 = smul.u32 384, %s264_s11 }
  0x1d   : > { %3148 = sst [smem:[#allocation12_spill]] %s2705_s10  ;;  %s2346_s14 = smul.u32 384, %s2584_s27 }
  0x1e   : > { %p2709_p9 = pnand %p2377_p5, %p40_p7  ;;  %s268_s19 = scalar_lea.vmem [#allocation2], %s2345_s13 }
  0x1f   : > { %s274_s18 = scalar_lea.hbm %s3132_s0, %s2346_s14  ;;  %s277_s20 = sshll.u32 %s268_s19, 4  ;;  %s278_s20 = int_to_ptr.vmem [resolvable:$true] %s277_s20 }
  0x20   : > { %s275_s21 = sshll.u32 %s274_s18, 4  ;;  %s265_s23 = scalar_lea.sflag [#allocation3], %s264_s11  ;;  %s276_s21 = int_to_ptr.hbm [resolvable:$true] %s275_s21 }
  0x21   : > { %s2484_s29 = sshra.s32 %s276_s21, 4  ;;  %p2488_p10 = pneg %p2709_p9  ;;  %s2485_s29 = int_to_ptr.hbm [resolvable:$true] %s2484_s29 }
  0x22   : > { %s2486_s3 = scalar_lea.hbm %s2485_s29, 384  ;;  %s2491_s16 = scalar_lea.hbm %s3132_s0, 768 }
  0x23   : > { %p2487_p2 = scmp.ne.s32.totalorder %s2485_s29, %s2486_s3  ;;  %p2492_p0 = scmp.lt.s32.totalorder %s2485_s29, %s3132_s0 }
  0x24   : > { %p2493_p5 = scmp.lt.s32.totalorder %s2491_s16, %s2486_s3 }
  0x25   : > { %p2489_p12 = pnand %p2488_p10, %p2487_p2 }
  0x26   : > { %p2494_p7 = por %p2493_p5, %p2492_p0 }
  0x27   : > { %p2490_p13 = pneg %p2489_p12 }
  0x29   : > { %p2495_p11 = pnand %p2494_p7, %p2490_p13 }
  0x2b   : > { %2498 = shalt.err (!%p2495_p11)
}
  0x2c   : > { %s2590_s11 = smov 768   ;;  %s2591_s13 = smov 48  }
  0x2d   : > { %2370 = dma.hbm_to_vmem [thread:$0]  (!%p2709_p9), %s276_s21, 6144, %s278_s20, %s265_s23, %s2590_s11, %s2590_s11, %s2591_s13  }
  0x2e   : > { %305 = sbr.rel (%p2676_p8) target bundleno = 562 (0x232), region = 48  ;;  %s2729_s5 = sand.u32 (!%p2676_p8), 1, %s2576_s25  }
  0x2f   : > { %s2347_s10 = smul.u32 (!%p2676_p8), 384, %s2729_s5  ;;  %s308_s18 = scalar_lea.sflag (!%p2676_p8), [#allocation3], %s2729_s5 }
  0x31   : > { %s2733_s3 = scalar_lea.vmem (!%p2676_p8), [#allocation2], %s2347_s10 }
  0x33   : > { %2559 = dma.done.wait (%p2663_p4), %s308_s18, 6144  }
  0x34   : > { %2561 = vsyncadd (%p2663_p4), %s308_s18, 4294961152 }
  0x35   : > { %2563 = dma.done.wait (%p45_p1), [#allocation6], 16384  }
  0x36   : > { %2565 = vsyncadd (%p45_p1), [#allocation6], 4294950912  ;;  %v1919_v0 = vld [vmem:[#allocation5 + $0x70] sm:$0xf]  ;;  %v2264_v1 = vld [vmem:[#allocation5 + $0x74] sm:$0xf0] }
  0x37   : > { %v1983_v2 = vld [vmem:[#allocation5 + $0xf0] sm:$0xf]  ;;  %v1920_v3 = vor.u32 %v2264_v1, %v1919_v0  ;;  %v2280_v4 = vld [vmem:[#allocation5 + $0xf4] sm:$0xf0]  ;;  %v1911_v11 = vld [vmem:[#allocation5 + $0x60] sm:$0xf] }
  0x38   : > { %v2047_v5 = vld [vmem:[#allocation5 + $0x170] sm:$0xf]  ;;  %v2296_v6 = vld [vmem:[#allocation5 + $0x174] sm:$0xf0]  ;;  %v1984_v7 = vor.u32 %v2280_v4, %v1983_v2  ;;  %v2262_v13 = vld [vmem:[#allocation5 + $0x64] sm:$0xf0] }
  0x39   : > { %v2048_v8 = vor.u32 %v2296_v6, %v2047_v5  ;;  %v2111_v9 = vld [vmem:[#allocation5 + $0x1f0] sm:$0xf]  ;;  %v2312_v10 = vld [vmem:[#allocation5 + $0x1f4] sm:$0xf0]  ;;  %1027 = vmatpush.bf16.msra.mxu0 %v1920_v3  ;;  %v1975_v14 = vld [vmem:[#allocation5 + $0xe0] sm:$0xf]  ;;  %v1912_v16 = vor.u32 %v2262_v13, %v1911_v11 }
  0x3a   : > { %v2112_v12 = vor.u32 %v2312_v10, %v2111_v9  ;;  %v2278_v15 = vld [vmem:[#allocation5 + $0xe4] sm:$0xf0]  ;;  %1056 = vmatpush.bf16.msra.mxu1 %v1984_v7  ;;  %v2039_v18 = vld [vmem:[#allocation5 + $0x160] sm:$0xf]  ;;  %v1903_v23 = vld [vmem:[#allocation5 + $0x50] sm:$0xf] }
  0x3b   : > { %1085 = vmatpush.bf16.msra.mxu2 %v2048_v8  ;;  %v1976_v17 = vor.u32 %v2278_v15, %v1975_v14  ;;  %v2294_v19 = vld [vmem:[#allocation5 + $0x164] sm:$0xf0]  ;;  %v2103_v20 = vld [vmem:[#allocation5 + $0x1e0] sm:$0xf]  ;;  %v2260_v24 = vld [vmem:[#allocation5 + $0x54] sm:$0xf0] }
  0x3c   : > { %1114 = vmatpush.bf16.msra.mxu3 %v2112_v12  ;;  %v2040_v21 = vor.u32 %v2294_v19, %v2039_v18  ;;  %v2310_v22 = vld [vmem:[#allocation5 + $0x1e4] sm:$0xf0]  ;;  %v1967_v26 = vld [vmem:[#allocation5 + $0xd0] sm:$0xf]  ;;  %v2276_v27 = vld [vmem:[#allocation5 + $0xd4] sm:$0xf0]  ;;  %v1904_v29 = vor.u32 %v2260_v24, %v1903_v23 }
  0x3d   : > { %v2104_v25 = vor.u32 %v2310_v22, %v2103_v20  ;;  %v2031_v28 = vld [vmem:[#allocation5 + $0x150] sm:$0xf]  ;;  %1028 = vmatpush.bf16.msra.mxu0 %v1912_v16  ;;  %v2292_v30 = vld [vmem:[#allocation5 + $0x154] sm:$0xf0]  ;;  %v1968_v33 = vor.u32 %v2276_v27, %v1967_v26  ;;  %v1895_v35 = vld [vmem:[#allocation5 + $0x40] sm:$0xf] }
  0x3e   : > { %v2095_v31 = vld [vmem:[#allocation5 + $0x1d0] sm:$0xf]  ;;  %v2308_v32 = vld [vmem:[#allocation5 + $0x1d4] sm:$0xf0]  ;;  %1057 = vmatpush.bf16.msra.mxu1 %v1976_v17  ;;  %v2032_v34 = vor.u32 %v2292_v30, %v2031_v28  ;;  %v2258_v36 = vld [vmem:[#allocation5 + $0x44] sm:$0xf0] }
  0x3f   : > { %1086 = vmatpush.bf16.msra.mxu2 %v2040_v21  ;;  %v1959_v37 = vld [vmem:[#allocation5 + $0xc0] sm:$0xf]  ;;  %v2096_v38 = vor.u32 %v2308_v32, %v2095_v31  ;;  %v2274_v39 = vld [vmem:[#allocation5 + $0xc4] sm:$0xf0]  ;;  %v1896_v44 = vor.u32 %v2258_v36, %v1895_v35  ;;  %v1887_v47 = vld [vmem:[#allocation5 + $0x30] sm:$0xf] }
  0x40   : > { %1115 = vmatpush.bf16.msra.mxu3 %v2104_v25  ;;  %v2023_v40 = vld [vmem:[#allocation5 + $0x140] sm:$0xf]  ;;  %v2290_v41 = vld [vmem:[#allocation5 + $0x144] sm:$0xf0]  ;;  %v1960_v45 = vor.u32 %v2274_v39, %v1959_v37  ;;  %v2256_v48 = vld [vmem:[#allocation5 + $0x34] sm:$0xf0] }
  0x41   : > { %v2087_v42 = vld [vmem:[#allocation5 + $0x1c0] sm:$0xf]  ;;  %v2306_v43 = vld [vmem:[#allocation5 + $0x1c4] sm:$0xf0]  ;;  %1029 = vmatpush.bf16.msra.mxu0 %v1904_v29  ;;  %v2024_v46 = vor.u32 %v2290_v41, %v2023_v40  ;;  %v1951_v49 = vld [vmem:[#allocation5 + $0xb0] sm:$0xf]  ;;  %v1888_v56 = vor.u32 %v2256_v48, %v1887_v47 }
  0x42   : > { %1058 = vmatpush.bf16.msra.mxu1 %v1968_v33  ;;  %v2088_v50 = vor.u32 %v2306_v43, %v2087_v42  ;;  %v2272_v51 = vld [vmem:[#allocation5 + $0xb4] sm:$0xf0]  ;;  %v2015_v52 = vld [vmem:[#allocation5 + $0x130] sm:$0xf]  ;;  %v1879_v59 = vld [vmem:[#allocation5 + $0x20] sm:$0xf] }
  0x43   : > { %1087 = vmatpush.bf16.msra.mxu2 %v2032_v34  ;;  %v2288_v53 = vld [vmem:[#allocation5 + $0x134] sm:$0xf0]  ;;  %v2079_v54 = vld [vmem:[#allocation5 + $0x1b0] sm:$0xf]  ;;  %v1952_v57 = vor.u32 %v2272_v51, %v1951_v49  ;;  %v2254_v60 = vld [vmem:[#allocation5 + $0x24] sm:$0xf0] }
  0x44   : > { %1116 = vmatpush.bf16.msra.mxu3 %v2096_v38  ;;  %v2304_v55 = vld [vmem:[#allocation5 + $0x1b4] sm:$0xf0]  ;;  %v2016_v58 = vor.u32 %v2288_v53, %v2015_v52  ;;  %v1943_v61 = vld [vmem:[#allocation5 + $0xa0] sm:$0xf]  ;;  %v2270_v63 = vld [vmem:[#allocation5 + $0xa4] sm:$0xf0]  ;;  %v1880_v4 = vor.u32 %v2254_v60, %v1879_v59 }
  0x45   : > { %1030 = vmatpush.bf16.msra.mxu0 %v1896_v44  ;;  %v2080_v62 = vor.u32 %v2304_v55, %v2079_v54  ;;  %v2007_v0 = vld [vmem:[#allocation5 + $0x120] sm:$0xf]  ;;  %v2286_v1 = vld [vmem:[#allocation5 + $0x124] sm:$0xf0]  ;;  %v1944_v5 = vor.u32 %v2270_v63, %v1943_v61  ;;  %v1871_v7 = vld [vmem:[#allocation5 + $0x10] sm:$0xf] }
  0x46   : > { %1059 = vmatpush.bf16.msra.mxu1 %v1960_v45  ;;  %v2071_v2 = vld [vmem:[#allocation5 + $0x1a0] sm:$0xf]  ;;  %v2302_v3 = vld [vmem:[#allocation5 + $0x1a4] sm:$0xf0]  ;;  %v2008_v6 = vor.u32 %v2286_v1, %v2007_v0  ;;  %v2252_v8 = vld [vmem:[#allocation5 + $0x14] sm:$0xf0] }
  0x47   : > { %1088 = vmatpush.bf16.msra.mxu2 %v2024_v46  ;;  %v1935_v9 = vld [vmem:[#allocation5 + $0x90] sm:$0xf]  ;;  %v2072_v10 = vor.u32 %v2302_v3, %v2071_v2  ;;  %v2268_v11 = vld [vmem:[#allocation5 + $0x94] sm:$0xf0]  ;;  %v1863_v16 = vld [vmem:[#allocation5] sm:$0xf]  ;;  %v1872_v17 = vor.u32 %v2252_v8, %v1871_v7 }
  0x48   : > { %1117 = vmatpush.bf16.msra.mxu3 %v2088_v50  ;;  %v1999_v12 = vld [vmem:[#allocation5 + $0x110] sm:$0xf]  ;;  %v2284_v13 = vld [vmem:[#allocation5 + $0x114] sm:$0xf0]  ;;  %v2250_v18 = vld [vmem:[#allocation5 + $0x4] sm:$0xf0]  ;;  %v1936_v21 = vor.u32 %v2268_v11, %v1935_v9 }
  0x49   : > { %1031 = vmatpush.bf16.msra.mxu0 %v1888_v56  ;;  %v2063_v14 = vld [vmem:[#allocation5 + $0x190] sm:$0xf]  ;;  %v2300_v15 = vld [vmem:[#allocation5 + $0x194] sm:$0xf0]  ;;  %v1927_v19 = vld [vmem:[#allocation5 + $0x80] sm:$0xf]  ;;  %v2000_v22 = vor.u32 %v2284_v13, %v1999_v12  ;;  %v1864_v34 = vor.u32 %v2250_v18, %v1863_v16 }
  0x4a   : > { %1060 = vmatpush.bf16.msra.mxu1 %v1952_v57  ;;  %v2266_v20 = vld [vmem:[#allocation5 + $0x84] sm:$0xf0]  ;;  %v1991_v23 = vld [vmem:[#allocation5 + $0x100] sm:$0xf]  ;;  %v2064_v26 = vor.u32 %v2300_v15, %v2063_v14  ;;  %v379_v29 = vld [vmem:[%s2733_s3 + $0x30] sm:$0xff]  ;;  %s2800_s30 = sshll.u32 %s2654_s28, 3 }
  0x4b   : > { %1089 = vmatpush.bf16.msra.mxu2 %v2016_v58  ;;  %v2282_v24 = vld [vmem:[#allocation5 + $0x104] sm:$0xf0]  ;;  %v2055_v25 = vld [vmem:[#allocation5 + $0x180] sm:$0xf]  ;;  %v380_v31 = vld [vmem:[%s2733_s3 + $0x38] sm:$0xff]  ;;  %v1928_v38 = vor.u32 %v2266_v20, %v1927_v19  ;;  %p364_p1 = scmp.lt.s32.totalorder %s2800_s30, 15 }
  0x4c   : > { %1118 = vmatpush.bf16.msra.mxu3 %v2080_v62  ;;  %v2298_v27 = vld [vmem:[#allocation5 + $0x184] sm:$0xf0]  ;;  %v373_v28 = vld [vmem:[%s2733_s3] sm:$0xff]  ;;  %v2263_v32 = vld [vmem:[#allocation5 + $0x74] sm:$0xf]  ;;  %v1992_v39 = vor.u32 %v2282_v24, %v1991_v23  ;;  %p369_p4 = scmp.lt.s32.totalorder %s2654_s28, 1 }
  0x4d   : > { %1032 = vmatpush.bf16.msra.mxu0 %v1880_v4  ;;  %v374_v30 = vld [vmem:[%s2733_s3 + $0x8] sm:$0xff]  ;;  %v1921_v33 = vld [vmem:[#allocation5 + $0x78] sm:$0xf0]  ;;  %v375_v35 = vld [vmem:[%s2733_s3 + $0x10] sm:$0xff]  ;;  %v2056_v43 = vor.u32 %v2298_v27, %v2055_v25  ;;  %v2751_v48 = vpack.c.bf16 %v379_v29, %v373_v28  ;;  %s365_s12 = scalar_select %p364_p1, %s2800_s30, 15  ;;  %vm1640_vm0 = vcmask 1041409  }
  0x4e   : > { %1061 = vmatpush.bf16.msra.mxu1 %v1944_v5  ;;  %v2279_v36 = vld [vmem:[#allocation5 + $0xf4] sm:$0xf]  ;;  %v1985_v37 = vld [vmem:[#allocation5 + $0xf8] sm:$0xf0]  ;;  %v381_v40 = vld [vmem:[%s2733_s3 + $0x40] sm:$0xff]  ;;  %v1924_v44 = vor.u32 %v2263_v32, %v1921_v33  ;;  %v2753_v53 = vpack.c.bf16 %v380_v31, %v374_v30  ;;  %s3157_s28 = smov (!%p369_p4, %s2654_s28), 1 }
  0x4f   : > { %1090 = vmatpush.bf16.msra.mxu2 %v2008_v6  ;;  %v376_v41 = vld [vmem:[%s2733_s3 + $0x18] sm:$0xff]  ;;  %v382_v42 = vld [vmem:[%s2733_s3 + $0x48] sm:$0xff]  ;;  %v2175_v45 = vld [vmem:[#allocation5 + $0x270] sm:$0xf]  ;;  %v1988_v49 = vor.u32 %v2279_v36, %v1985_v37  ;;  %v2755_v54 = vpack.c.bf16 %v381_v40, %v375_v35  ;;  %s1859_s15 = sshll.u32 %s365_s12, 3  ;;  %s1860_s23 = sshll.u32 %s3157_s28, 3 }
  0x50   : > { %1119 = vmatpush.bf16.msra.mxu3 %v2072_v10  ;;  %v2328_v46 = vld [vmem:[#allocation5 + $0x274] sm:$0xf0]  ;;  %v2239_v47 = vld [vmem:[#allocation5 + $0x2f0] sm:$0xf]  ;;  %v2261_v51 = vld [vmem:[#allocation5 + $0x64] sm:$0xf]  ;;  %v2757_v57 = vpack.c.bf16 %v382_v42, %v376_v41  ;;  %s2829_s21 = scalar_lea.vmem %s3133_s1, %s1859_s15  ;;  %s372_s17 = scalar_lea.vmem %s3134_s2, %s1860_s23 }
  0x51   : > { %1033 = vmatpush.bf16.msra.mxu0 %v1872_v17  ;;  %v2344_v50 = vld [vmem:[#allocation5 + $0x2f4] sm:$0xf0]  ;;  %v1913_v52 = vld [vmem:[#allocation5 + $0x68] sm:$0xf0]  ;;  %v2277_v55 = vld [vmem:[#allocation5 + $0xe4] sm:$0xf]  ;;  %v2176_v58 = vor.u32 %v2328_v46, %v2175_v45  ;;  %s1728_s12 = scalar_lea.hbm %s3139_s7, %s2800_s30 }
  0x52   : > { %1062 = vmatpush.bf16.msra.mxu1 %v1936_v21  ;;  %v1977_v56 = vld [vmem:[#allocation5 + $0xe8] sm:$0xf0]  ;;  %v2240_v59 = vor.u32 %v2344_v50, %v2239_v47  ;;  %v1916_v60 = vor.u32 %v2261_v51, %v1913_v52  ;;  %v2167_v61 = vld [vmem:[#allocation5 + $0x260] sm:$0xf]  ;;  %v2326_v62 = vld [vmem:[#allocation5 + $0x264] sm:$0xf0] }
  0x53   : > { %1091 = vmatpush.bf16.msra.mxu2 %v2000_v22  ;;  %v2231_v63 = vld [vmem:[#allocation5 + $0x2e0] sm:$0xf]  ;;  %v1980_v0 = vor.u32 %v2277_v55, %v1977_v56  ;;  %v2342_v1 = vld [vmem:[#allocation5 + $0x2e4] sm:$0xf0]  ;;  %v2259_v2 = vld [vmem:[#allocation5 + $0x54] sm:$0xf]  ;;  %v2168_v6 = vor.u32 %v2326_v62, %v2167_v61 }
  0x54   : > { %1120 = vmatpush.bf16.msra.mxu3 %v2064_v26  ;;  %v1905_v3 = vld [vmem:[#allocation5 + $0x58] sm:$0xf0]  ;;  %v2275_v4 = vld [vmem:[#allocation5 + $0xd4] sm:$0xf]  ;;  %v2232_v7 = vor.u32 %v2342_v1, %v2231_v63  ;;  %v2159_v9 = vld [vmem:[#allocation5 + $0x250] sm:$0xf] }
  0x55   : > { %1034 = vmatpush.bf16.msra.mxu0 %v1864_v34  ;;  %v1969_v5 = vld [vmem:[#allocation5 + $0xd8] sm:$0xf0]  ;;  %v1908_v8 = vor.u32 %v2259_v2, %v1905_v3  ;;  %v2324_v10 = vld [vmem:[#allocation5 + $0x254] sm:$0xf0]  ;;  %v2223_v11 = vld [vmem:[#allocation5 + $0x2d0] sm:$0xf] }
  0x56   : > { %1063 = vmatpush.bf16.msra.mxu1 %v1928_v38  ;;  %v1972_v12 = vor.u32 %v2275_v4, %v1969_v5  ;;  %v2340_v13 = vld [vmem:[#allocation5 + $0x2d4] sm:$0xf0]  ;;  %v2257_v14 = vld [vmem:[#allocation5 + $0x44] sm:$0xf]  ;;  %v1897_v15 = vld [vmem:[#allocation5 + $0x48] sm:$0xf0]  ;;  %v2160_v18 = vor.u32 %v2324_v10, %v2159_v9 }
  0x57   : > { %1092 = vmatpush.bf16.msra.mxu2 %v1992_v39  ;;  %v2273_v16 = vld [vmem:[#allocation5 + $0xc4] sm:$0xf]  ;;  %v1961_v17 = vld [vmem:[#allocation5 + $0xc8] sm:$0xf0]  ;;  %v391_v20 = vld [vmem:[%s2733_s3 + $0x90] sm:$0xff]  ;;  %v2224_v21 = vor.u32 %v2340_v13, %v2223_v11  ;;  %v1900_v22 = vor.u32 %v2257_v14, %v1897_v15  ;;  %vm1643_vm1 = vcmask 1042434  }
  0x58   : > { %1121 = vmatpush.bf16.msra.mxu3 %v2056_v43  ;;  %1035 = vmatmul.bf16.vlgmr.msra.gmra.mxu0 %v2751_v48  ;;  %v385_v19 = vld [vmem:[%s2733_s3 + $0x60] sm:$0xff]  ;;  %v2322_v24 = vld [vmem:[#allocation5 + $0x244] sm:$0xf0]  ;;  %v392_v27 = vld [vmem:[%s2733_s3 + $0x98] sm:$0xff]  ;;  %v1964_v29 = vor.u32 %v2273_v16, %v1961_v17  ;;  %vm1646_vm2 = vcmask 1043459   ;;  %vm1649_vm3 = vcmask 1044484  }
  0x59   : > { %1064 = vmatmul.bf16.vlgmr.msra.gmra.mxu1 %v2753_v53  ;;  %1143 = vmatpush.bf16.msrb.mxu0 %v2176_v58  ;;  %v2151_v23 = vld [vmem:[#allocation5 + $0x240] sm:$0xf]  ;;  %v386_v26 = vld [vmem:[%s2733_s3 + $0x68] sm:$0xff]  ;;  %v387_v28 = vld [vmem:[%s2733_s3 + $0x70] sm:$0xff]  ;;  %v2771_v45 = vpack.c.bf16 %v391_v20, %v385_v19  ;;  %vm1652_vm4 = vcmask 1045509   ;;  %vm1655_vm5 = vcmask 1046534  }
  0x5a   : > { %1093 = vmatmul.bf16.vlgmr.msra.gmra.mxu2 %v2755_v54  ;;  %1172 = vmatpush.bf16.msrb.mxu1 %v2240_v59  ;;  %v2215_v25 = vld [vmem:[#allocation5 + $0x2c0] sm:$0xf]  ;;  %v2338_v30 = vld [vmem:[#allocation5 + $0x2c4] sm:$0xf0]  ;;  %v2255_v31 = vld [vmem:[#allocation5 + $0x34] sm:$0xf]  ;;  %v2152_v38 = vor.u32 %v2322_v24, %v2151_v23  ;;  %v2773_v50 = vpack.c.bf16 %v392_v27, %v386_v26 }
  0x5b   : > { %1201 = vmatpush.bf16.msrb.mxu2 %v1924_v44  ;;  %1122 = vmatmul.bf16.vlgmr.msra.gmra.mxu3 %v2757_v57  ;;  %v1889_v32 = vld [vmem:[#allocation5 + $0x38] sm:$0xf0]  ;;  %v393_v33 = vld [vmem:[%s2733_s3 + $0xa0] sm:$0xff]  ;;  %v2271_v34 = vld [vmem:[#allocation5 + $0xb4] sm:$0xf]  ;;  %v2216_v40 = vor.u32 %v2338_v30, %v2215_v25  ;;  %vm1658_vm6 = vcmask 1047559  }
  0x5c   : > { %1230 = vmatpush.bf16.msrb.mxu3 %v1988_v49  ;;  %v1953_v35 = vld [vmem:[#allocation5 + $0xb8] sm:$0xf0]  ;;  %v394_v37 = vld [vmem:[%s2733_s3 + $0xa8] sm:$0xff]  ;;  %v2143_v39 = vld [vmem:[#allocation5 + $0x230] sm:$0xf]  ;;  %v1892_v41 = vor.u32 %v2255_v31, %v1889_v32  ;;  %v2775_v51 = vpack.c.bf16 %v393_v33, %v387_v28  ;;  %s1857_s11 = sshll.u32 %s2729_s5, 3 }
  0x5d   : > { %1144 = vmatpush.bf16.msrb.mxu0 %v2168_v6  ;;  %v388_v36 = vld [vmem:[%s2733_s3 + $0x78] sm:$0xff]  ;;  %v2207_v43 = vld [vmem:[#allocation5 + $0x2b0] sm:$0xf]  ;;  %v1956_v46 = vor.u32 %v2271_v34, %v1953_v35  ;;  %v2253_v47 = vld [vmem:[#allocation5 + $0x24] sm:$0xf]  ;;  %s361_s15 = scalar_lea.vmem [#allocation8], %s1857_s11 }
  0x5e   : > { %1173 = vmatpush.bf16.msrb.mxu1 %v2232_v7  ;;  %v2320_v42 = vld [vmem:[#allocation5 + $0x234] sm:$0xf0]  ;;  %v1881_v49 = vld [vmem:[#allocation5 + $0x28] sm:$0xf0]  ;;  %v2269_v52 = vld [vmem:[#allocation5 + $0xa4] sm:$0xf]  ;;  %v2777_v56 = vpack.c.bf16 %v394_v37, %v388_v36 }
  0x5f   : > { %1202 = vmatpush.bf16.msrb.mxu2 %v1916_v60  ;;  %v2336_v44 = vld [vmem:[#allocation5 + $0x2b4] sm:$0xf0]  ;;  %v1945_v55 = vld [vmem:[#allocation5 + $0xa8] sm:$0xf0]  ;;  %v2144_v58 = vor.u32 %v2320_v42, %v2143_v39  ;;  %v1884_v60 = vor.u32 %v2253_v47, %v1881_v49  ;;  %v2135_v61 = vld [vmem:[#allocation5 + $0x220] sm:$0xf] }
  0x60   : > { %1231 = vmatpush.bf16.msrb.mxu3 %v1980_v0  ;;  %v2208_v59 = vor.u32 %v2336_v44, %v2207_v43  ;;  %v2318_v62 = vld [vmem:[#allocation5 + $0x224] sm:$0xf0]  ;;  %v1948_v63 = vor.u32 %v2269_v52, %v1945_v55  ;;  %v2199_v0 = vld [vmem:[#allocation5 + $0x2a0] sm:$0xf]  ;;  %v2251_v3 = vld [vmem:[#allocation5 + $0x14] sm:$0xf] }
  0x61   : > { %1145 = vmatpush.bf16.msrb.mxu0 %v2160_v18  ;;  %v2334_v1 = vld [vmem:[#allocation5 + $0x2a4] sm:$0xf0]  ;;  %v2136_v2 = vor.u32 %v2318_v62, %v2135_v61  ;;  %v1873_v4 = vld [vmem:[#allocation5 + $0x18] sm:$0xf0]  ;;  %v2127_v5 = vld [vmem:[#allocation5 + $0x210] sm:$0xf] }
  0x62   : > { %1174 = vmatpush.bf16.msrb.mxu1 %v2224_v21  ;;  %v2200_v6 = vor.u32 %v2334_v1, %v2199_v0  ;;  %v1876_v7 = vor.u32 %v2251_v3, %v1873_v4  ;;  %v2267_v9 = vld [vmem:[#allocation5 + $0x94] sm:$0xf]  ;;  %v1937_v10 = vld [vmem:[#allocation5 + $0x98] sm:$0xf0]  ;;  %v2332_v13 = vld [vmem:[#allocation5 + $0x294] sm:$0xf0] }
  0x63   : > { %1203 = vmatpush.bf16.msrb.mxu2 %v1908_v8  ;;  %v2316_v8 = vld [vmem:[#allocation5 + $0x214] sm:$0xf0]  ;;  %v1940_v11 = vor.u32 %v2267_v9, %v1937_v10  ;;  %v2249_v14 = vld [vmem:[#allocation5 + $0x4] sm:$0xf]  ;;  %v1865_v15 = vld [vmem:[#allocation5 + $0x8] sm:$0xf0] }
  0x64   : > { %1232 = vmatpush.bf16.msrb.mxu3 %v1972_v12  ;;  %v2191_v12 = vld [vmem:[#allocation5 + $0x290] sm:$0xf]  ;;  %v2128_v16 = vor.u32 %v2316_v8, %v2127_v5  ;;  %v2265_v17 = vld [vmem:[#allocation5 + $0x84] sm:$0xf]  ;;  %v1929_v18 = vld [vmem:[#allocation5 + $0x88] sm:$0xf0]  ;;  %v1868_v20 = vor.u32 %v2249_v14, %v1865_v15 }
  0x65   : > { %1146 = vmatpush.bf16.msrb.mxu0 %v2152_v38  ;;  %v2192_v19 = vor.u32 %v2332_v13, %v2191_v12  ;;  %v2119_v21 = vld [vmem:[#allocation5 + $0x200] sm:$0xf]  ;;  %v1932_v23 = vor.u32 %v2265_v17, %v1929_v18  ;;  %v2330_v25 = vld [vmem:[#allocation5 + $0x284] sm:$0xf0]  ;;  %v403_v27 = vld [vmem:[%s2733_s3 + $0xf0] sm:$0xff]  ;;  %v2592_v8 = vmov 0  }
  0x66   : > { %1175 = vmatpush.bf16.msrb.mxu1 %v2216_v40  ;;  %v2183_v24 = vld [vmem:[#allocation5 + $0x280] sm:$0xf]  ;;  %v398_v28 = vld [vmem:[%s2733_s3 + $0xc8] sm:$0xff]  ;;  %v399_v30 = vld [vmem:[%s2733_s3 + $0xd0] sm:$0xff]  ;;  %2421 = vset.pattern.permute.xlu1 %v2592_v8  ;;  %s1730_s19 = sshll.u32 %s361_s15, 4  ;;  %s1732_s20 = sshll.u32 %s1728_s12, 4  ;;  %s1731_s19 = int_to_ptr.vmem [resolvable:$true] %s1730_s19  ;;  %s1733_s20 = int_to_ptr.hbm [resolvable:$true] %s1732_s20 }
  0x67   : > { %1204 = vmatpush.bf16.msrb.mxu2 %v1900_v22  ;;  %v2314_v22 = vld [vmem:[#allocation5 + $0x204] sm:$0xf0]  ;;  %v397_v26 = vld [vmem:[%s2733_s3 + $0xc0] sm:$0xff]  ;;  %v400_v33 = vld [vmem:[%s2733_s3 + $0xd8] sm:$0xff]  ;;  %v2184_v35 = vor.u32 %v2330_v25, %v2183_v24  ;;  %2420 = vset.pattern.permute.xlu0 %v2592_v8  ;;  %s2528_s23 = sshra.s32 %s1733_s20, 4  ;;  %s2529_s23 = int_to_ptr.hbm [resolvable:$true] %s2528_s23 }
  0x68   : > { %1233 = vmatpush.bf16.msrb.mxu3 %v1964_v29  ;;  %1040 = vmatmul.bf16.gmra.mxu0 %v2771_v45  ;;  %v404_v29 = vld [vmem:[%s2733_s3 + $0xf8] sm:$0xff]  ;;  %v405_v31 = vld [vmem:[%s2733_s3 + $0x100] sm:$0xff]  ;;  %v2120_v32 = vor.u32 %v2314_v22, %v2119_v21  ;;  %v406_v34 = vld [vmem:[%s2733_s3 + $0x108] sm:$0xff]  ;;  %v2791_v36 = vpack.c.bf16 %v403_v27, %v397_v26  ;;  %s2530_s29 = scalar_lea.hbm %s2529_s23, 8  ;;  %p2535_p2 = scmp.lt.s32.totalorder %s2529_s23, %s3139_s7 }
  0x69   : > { %1069 = vmatmul.bf16.gmra.mxu1 %v2773_v50  ;;  %1147 = vmatpush.bf16.msrb.mxu0 %v2144_v58  ;;  %v2793_v37 = vpack.c.bf16 %v404_v29, %v398_v28  ;;  %v2795_v38 = vpack.c.bf16 %v405_v31, %v399_v30  ;;  %v2797_v39 = vpack.c.bf16 %v406_v34, %v400_v33  ;;  %v2327_v40 = vld [vmem:[#allocation5 + $0x274] sm:$0xf]  ;;  %v2049_v44 = vld [vmem:[#allocation5 + $0x178] sm:$0xf0]  ;;  %v2169_v61 = vld [vmem:[#allocation5 + $0x268] sm:$0xf0]  ;;  %p2531_p8 = scmp.ne.s32.totalorder %s2529_s23, %s2530_s29 }
  0x6a   : > { %1098 = vmatmul.bf16.gmra.mxu2 %v2775_v51  ;;  %1176 = vmatpush.bf16.msrb.mxu1 %v2208_v59  ;;  %v2295_v42 = vld [vmem:[#allocation5 + $0x174] sm:$0xf]  ;;  %v2241_v47 = vld [vmem:[#allocation5 + $0x2f8] sm:$0xf0]  ;;  %v2325_v59 = vld [vmem:[#allocation5 + $0x264] sm:$0xf] }
  0x6b   : > { %1205 = vmatpush.bf16.msrb.mxu2 %v1892_v41  ;;  %1127 = vmatmul.bf16.gmra.mxu3 %v2777_v56  ;;  %v2177_v41 = vld [vmem:[#allocation5 + $0x278] sm:$0xf0]  ;;  %v2052_v49 = vor.u32 %v2295_v42, %v2049_v44  ;;  %v2311_v55 = vld [vmem:[#allocation5 + $0x1f4] sm:$0xf]  ;;  %v2293_v62 = vld [vmem:[#allocation5 + $0x164] sm:$0xf]  ;;  %v2172_v0 = vor.u32 %v2325_v59, %v2169_v61  ;;  %p2532_p11 = pnand %p2531_p8, %p2699_p3 }
  0x6c   : > { %1234 = vmatpush.bf16.msrb.mxu3 %v1956_v46  ;;  %v2180_v43 = vor.u32 %v2327_v40, %v2177_v41  ;;  %v2343_v46 = vld [vmem:[#allocation5 + $0x2f4] sm:$0xf]  ;;  %v2113_v58 = vld [vmem:[#allocation5 + $0x1f8] sm:$0xf0]  ;;  %v2233_v3 = vld [vmem:[#allocation5 + $0x2e8] sm:$0xf0]  ;;  %2422 = vset.pattern.permute.xlu2 %v2592_v8 }
  0x6d   : > { %1148 = vmatpush.bf16.msrb.mxu0 %v2136_v2  ;;  %v2244_v52 = vor.u32 %v2343_v46, %v2241_v47  ;;  %v2341_v2 = vld [vmem:[#allocation5 + $0x2e4] sm:$0xf]  ;;  %v415_v10 = vld [vmem:[%s2733_s3 + $0x150] sm:$0xff]  ;;  %v416_v12 = vld [vmem:[%s2733_s3 + $0x158] sm:$0xff]  ;;  %p2533_p9 = pneg %p2532_p11 }
  0x6e   : > { %1177 = vmatpush.bf16.msrb.mxu1 %v2200_v6  ;;  %v2309_v4 = vld [vmem:[#allocation5 + $0x1e4] sm:$0xf]  ;;  %v2236_v5 = vor.u32 %v2341_v2, %v2233_v3  ;;  %v2105_v6 = vld [vmem:[#allocation5 + $0x1e8] sm:$0xf0]  ;;  %v411_v13 = vld [vmem:[%s2733_s3 + $0x130] sm:$0xff] }
  0x6f   : > { %1206 = vmatpush.bf16.msrb.mxu2 %v1884_v60  ;;  %v2116_v60 = vor.u32 %v2311_v55, %v2113_v58  ;;  %v409_v9 = vld [vmem:[%s2733_s3 + $0x120] sm:$0xff]  ;;  %v412_v15 = vld [vmem:[%s2733_s3 + $0x138] sm:$0xff]  ;;  %v2323_v21 = vld [vmem:[#allocation5 + $0x254] sm:$0xf] }
  0x70   : > { %1235 = vmatpush.bf16.msrb.mxu3 %v1948_v63  ;;  %v2041_v63 = vld [vmem:[#allocation5 + $0x168] sm:$0xf0]  ;;  %v417_v14 = vld [vmem:[%s2733_s3 + $0x160] sm:$0xff]  ;;  %v2818_v17 = vpack.c.bf16 %v415_v10, %v409_v9  ;;  %v2161_v22 = vld [vmem:[#allocation5 + $0x258] sm:$0xf0] }
  0x71   : > { %1149 = vmatpush.bf16.msrb.mxu0 %v2128_v16  ;;  %v2044_v1 = vor.u32 %v2293_v62, %v2041_v63  ;;  %v418_v16 = vld [vmem:[%s2733_s3 + $0x168] sm:$0xff]  ;;  %v2164_v24 = vor.u32 %v2323_v21, %v2161_v22  ;;  %v2291_v25 = vld [vmem:[#allocation5 + $0x154] sm:$0xf]  ;;  %v2033_v26 = vld [vmem:[#allocation5 + $0x158] sm:$0xf0] }
  0x72   : > { %1178 = vmatpush.bf16.msrb.mxu1 %v2192_v19  ;;  %v2822_v19 = vpack.c.bf16 %v417_v14, %v411_v13  ;;  %v2339_v27 = vld [vmem:[#allocation5 + $0x2d4] sm:$0xf]  ;;  %v2036_v28 = vor.u32 %v2291_v25, %v2033_v26  ;;  %v2225_v29 = vld [vmem:[#allocation5 + $0x2d8] sm:$0xf0]  ;;  %v2321_v34 = vld [vmem:[#allocation5 + $0x244] sm:$0xf] }
  0x73   : > { %1207 = vmatpush.bf16.msrb.mxu2 %v1876_v7  ;;  %v2108_v7 = vor.u32 %v2309_v4, %v2105_v6  ;;  %v2307_v30 = vld [vmem:[#allocation5 + $0x1d4] sm:$0xf]  ;;  %v2097_v31 = vld [vmem:[#allocation5 + $0x1d8] sm:$0xf0]  ;;  %v1392_v40 = vld [vmem:[%s2829_s21 + $0x8] sm:$0xff] }
  0x74   : > { %1236 = vmatpush.bf16.msrb.mxu3 %v1940_v11  ;;  %v410_v11 = vld [vmem:[%s2733_s3 + $0x128] sm:$0xff]  ;;  %v2100_v33 = vor.u32 %v2307_v30, %v2097_v31  ;;  %1406 = vperm.xlu0 %2420, %v1392_v40   ;;  %v2289_v42 = vld [vmem:[#allocation5 + $0x144] sm:$0xf]  ;;  %v384_v62 = vld [vmem:[%s2733_s3 + $0x58] sm:$0xff] }
  0x75   : > { %1150 = vmatpush.bf16.msrb.mxu0 %v2120_v32  ;;  %v2820_v18 = vpack.c.bf16 %v416_v12, %v410_v11  ;;  %v2228_v32 = vor.u32 %v2339_v27, %v2225_v29  ;;  %v2337_v44 = vld [vmem:[#allocation5 + $0x2c4] sm:$0xf]  ;;  %v2217_v47 = vld [vmem:[#allocation5 + $0x2c8] sm:$0xf0]  ;;  %v2145_v2 = vld [vmem:[#allocation5 + $0x238] sm:$0xf0] }
  0x76   : > { %1179 = vmatpush.bf16.msrb.mxu1 %v2184_v35  ;;  %v2153_v35 = vld [vmem:[#allocation5 + $0x248] sm:$0xf0]  ;;  %v2220_v55 = vor.u32 %v2337_v44, %v2217_v47  ;;  %v377_v59 = vld [vmem:[%s2733_s3 + $0x20] sm:$0xff]  ;;  %v1393_v3 = vld [vmem:[%s2829_s21 + $0x10] sm:$0xff] }
  0x77   : > { %1208 = vmatpush.bf16.msrb.mxu2 %v1868_v20  ;;  %v2824_v20 = vpack.c.bf16 %v418_v16, %v412_v15  ;;  %v2156_v41 = vor.u32 %v2321_v34, %v2153_v35  ;;  %v378_v61 = vld [vmem:[%s2733_s3 + $0x28] sm:$0xff]  ;;  %v2017_v6 = vld [vmem:[#allocation5 + $0x138] sm:$0xf0]  ;;  %v2303_v10 = vld [vmem:[#allocation5 + $0x1b4] sm:$0xf] }
  0x78   : > { %1237 = vmatpush.bf16.msrb.mxu3 %v1932_v23  ;;  %1045 = vmatmul.bf16.gmra.mxu0 %v2791_v36  ;;  %v1391_v23 = vld [vmem:[%s2829_s21] sm:$0xff]  ;;  %v2209_v9 = vld [vmem:[#allocation5 + $0x2b8] sm:$0xf0]  ;;  %v2137_v14 = vld [vmem:[#allocation5 + $0x228] sm:$0xf0] }
  0x79   : > { %1074 = vmatmul.bf16.gmra.mxu1 %v2793_v37  ;;  %1259 = vmatpush.bf16.msra.mxu0 %v2052_v49  ;;  %v2305_v49 = vld [vmem:[#allocation5 + $0x1c4] sm:$0xf]  ;;  %v2081_v11 = vld [vmem:[#allocation5 + $0x1b8] sm:$0xf0]  ;;  %v2009_v22 = vld [vmem:[#allocation5 + $0x128] sm:$0xf0] }
  0x7a   : > { %1103 = vmatmul.bf16.gmra.mxu2 %v2795_v38  ;;  %1288 = vmatpush.bf16.msra.mxu1 %v2116_v60  ;;  %v383_v60 = vld [vmem:[%s2733_s3 + $0x50] sm:$0xff]  ;;  %v1395_v13 = vld [vmem:[%s2829_s21 + $0x20] sm:$0xff]  ;;  %v1394_v16 = vld [vmem:[%s2829_s21 + $0x18] sm:$0xff] }
  0x7b   : > { %1132 = vmatmul.bf16.gmra.mxu3 %v2797_v39  ;;  %1317 = vmatpush.bf16.msra.mxu2 %v2180_v43  ;;  %v2025_v43 = vld [vmem:[#allocation5 + $0x148] sm:$0xf0]  ;;  %v2841_v63 = vpack.c.bf16 %v383_v60, %v377_v59  ;;  %v2285_v21 = vld [vmem:[#allocation5 + $0x124] sm:$0xf]  ;;  %v395_v30 = vld [vmem:[%s2733_s3 + $0xb0] sm:$0xff] }
  0x7c   : > { %1346 = vmatpush.bf16.msra.mxu3 %v2244_v52  ;;  %1401 = vperm.xlu1 %2421, %v1391_v23   ;;  %v2028_v46 = vor.u32 %v2289_v42, %v2025_v43  ;;  %v2089_v52 = vld [vmem:[#allocation5 + $0x1c8] sm:$0xf0]  ;;  %v2012_v23 = vor.u32 %v2285_v21, %v2009_v22  ;;  %v2301_v26 = vld [vmem:[#allocation5 + $0x1a4] sm:$0xf]  ;;  %v2129_v42 = vld [vmem:[#allocation5 + $0x218] sm:$0xf0] }
  0x7d   : > { %1260 = vmatpush.bf16.msra.mxu0 %v2044_v1  ;;  %v2092_v58 = vor.u32 %v2305_v49, %v2089_v52  ;;  %v2319_v1 = vld [vmem:[#allocation5 + $0x234] sm:$0xf]  ;;  %1411 = vperm.xlu0 %2420, %v1393_v3   ;;  %v2201_v25 = vld [vmem:[#allocation5 + $0x2a8] sm:$0xf0]  ;;  %v389_v29 = vld [vmem:[%s2733_s3 + $0x80] sm:$0xff] }
  0x7e   : > { %1289 = vmatpush.bf16.msra.mxu1 %v2108_v7  ;;  %v2148_v4 = vor.u32 %v2319_v1, %v2145_v2  ;;  %v2335_v7 = vld [vmem:[#allocation5 + $0x2b4] sm:$0xf]  ;;  %1421 = vperm.xlu2 %2422, %v1395_v13   ;;  %v1396_v34 = vld [vmem:[%s2829_s21 + $0x28] sm:$0xff]  ;;  %v2861_v35 = vpack.c.bf16 %v395_v30, %v389_v29  ;;  %v2193_v49 = vld [vmem:[#allocation5 + $0x298] sm:$0xf0] }
  0x7f   : > { %1318 = vmatpush.bf16.msra.mxu2 %v2172_v0  ;;  %v2843_v0 = vpack.c.bf16 %v384_v62, %v378_v61  ;;  %v2212_v12 = vor.u32 %v2335_v7, %v2209_v9  ;;  %v2283_v43 = vld [vmem:[#allocation5 + $0x114] sm:$0xf]  ;;  %v2065_v59 = vld [vmem:[#allocation5 + $0x198] sm:$0xf0]  ;;  %v1551_v60 = vld [vmem:[%s372_s17] sm:$0xff]  ;;  %s2534_s17 = scalar_lea.hbm %s3139_s7, 16 }
  0x80   : > { %1347 = vmatpush.bf16.msra.mxu3 %v2236_v5  ;;  %v2287_v5 = vld [vmem:[#allocation5 + $0x134] sm:$0xf]  ;;  %v2313_v61 = vld [vmem:[#allocation5 + $0x204] sm:$0xf]  ;;  %v2121_v62 = vld [vmem:[#allocation5 + $0x208] sm:$0xf0]  ;;  %p2536_p10 = scmp.lt.s32.totalorder %s2534_s17, %s2530_s29 }
  0x81   : > { %1261 = vmatpush.bf16.msra.mxu0 %v2036_v28  ;;  %v2020_v8 = vor.u32 %v2287_v5, %v2017_v6  ;;  %v2073_v28 = vld [vmem:[#allocation5 + $0x1a8] sm:$0xf0]  ;;  %v2331_v47 = vld [vmem:[#allocation5 + $0x294] sm:$0xf]  ;;  %v2281_v1 = vld [vmem:[#allocation5 + $0x104] sm:$0xf] }
  0x82   : > { %1290 = vmatpush.bf16.msra.mxu1 %v2100_v33  ;;  %v2076_v31 = vor.u32 %v2301_v26, %v2073_v28  ;;  %v396_v33 = vld [vmem:[%s2733_s3 + $0xb8] sm:$0xff]  ;;  %v1993_v2 = vld [vmem:[#allocation5 + $0x108] sm:$0xf0]  ;;  %v2329_v3 = vld [vmem:[#allocation5 + $0x284] sm:$0xf]  ;;  %p2537_p12 = por %p2536_p10, %p2535_p2 }
  0x83   : > { %1319 = vmatpush.bf16.msra.mxu2 %v2164_v24  ;;  %v2333_v24 = vld [vmem:[#allocation5 + $0x2a4] sm:$0xf]  ;;  %v1996_v5 = vor.u32 %v2281_v1, %v1993_v2  ;;  %v419_v21 = vld [vmem:[%s2733_s3 + $0x170] sm:$0xff]  ;;  %v414_v22 = vld [vmem:[%s2733_s3 + $0x148] sm:$0xff] }
  0x84   : > { %1348 = vmatpush.bf16.msra.mxu3 %v2228_v32  ;;  %1416 = vperm.xlu1 %2421, %v1394_v16   ;;  %v2204_v27 = vor.u32 %v2333_v24, %v2201_v25  ;;  %v390_v32 = vld [vmem:[%s2733_s3 + $0x88] sm:$0xff]  ;;  %v2297_v7 = vld [vmem:[#allocation5 + $0x184] sm:$0xf]  ;;  %p2538_p13 = pnand %p2537_p12, %p2533_p9 }
  0x85   : > { %1262 = vmatpush.bf16.msra.mxu0 %v2028_v46  ;;  %v2863_v40 = vpack.c.bf16 %v396_v33, %v390_v32  ;;  %v2001_v46 = vld [vmem:[#allocation5 + $0x118] sm:$0xf0]  ;;  %v413_v16 = vld [vmem:[%s2733_s3 + $0x140] sm:$0xff] }
  0x86   : > { %1291 = vmatpush.bf16.msra.mxu1 %v2092_v58  ;;  %1426 = vperm.xlu2 %2422, %v1396_v34   ;;  %v2004_v52 = vor.u32 %v2283_v43, %v2001_v46  ;;  %v2299_v58 = vld [vmem:[#allocation5 + $0x194] sm:$0xf]  ;;  %v2890_v24 = vpack.c.bf16 %v419_v21, %v413_v16 }
  0x87   : > { %1320 = vmatpush.bf16.msra.mxu2 %v2156_v41  ;;  %v2315_v41 = vld [vmem:[#allocation5 + $0x214] sm:$0xf] }
  0x88   : > { %1050 = vmatmul.bf16.gmra.mxu0 %v2818_v17  ;;  %1349 = vmatpush.bf16.msra.mxu3 %v2220_v55  ;;  %v2132_v44 = vor.u32 %v2315_v41, %v2129_v42  ;;  %v2196_v55 = vor.u32 %v2331_v47, %v2193_v49 }
  0x89   : > { %1079 = vmatmul.bf16.gmra.mxu1 %v2820_v18  ;;  %1263 = vmatpush.bf16.msra.mxu0 %v2020_v8  ;;  %v2057_v8 = vld [vmem:[#allocation5 + $0x188] sm:$0xf0] }
  0x8a   : > { %1108 = vmatmul.bf16.gmra.mxu2 %v2822_v19  ;;  %v2060_v9 = vor.u32 %v2297_v7, %v2057_v8 }
  0x8b   : > { %1137 = vmatmul.bf16.gmra.mxu3 %v2824_v20  ;;  %1321 = vmatpush.bf16.msra.mxu2 %v2148_v4  ;;  %v2185_v4 = vld [vmem:[#allocation5 + $0x288] sm:$0xf0] }
  0x8c   : > { %1350 = vmatpush.bf16.msra.mxu3 %v2212_v12  ;;  %v2188_v6 = vor.u32 %v2329_v3, %v2185_v4  ;;  %v402_v12 = vld [vmem:[%s2733_s3 + $0xe8] sm:$0xff] }
  0x8d   : > { %1264 = vmatpush.bf16.msra.mxu0 %v2012_v23  ;;  %v420_v23 = vld [vmem:[%s2733_s3 + $0x178] sm:$0xff] }
  0x8e   : > { %1554 = vperm.xlu2 %2422, %v1551_v60   ;;  %v2892_v25 = vpack.c.bf16 %v420_v23, %v414_v22 }
  0x90   : > { %1351 = vmatpush.bf16.msra.mxu3 %v2204_v27 }
  0x91   : > { %1265 = vmatpush.bf16.msra.mxu0 %v2004_v52 }
  0x94   : > { %1352 = vmatpush.bf16.msra.mxu3 %v2196_v55 }
  0x95   : > { %1266 = vmatpush.bf16.msra.mxu0 %v1996_v5 }
  0x98   : > { %1151 = vmatmul.bf16.vlgmr.msrb.gmra.mxu0 %v2841_v63  ;;  %1353 = vmatpush.bf16.msra.mxu3 %v2188_v6 }
  0x99   : > { %1180 = vmatmul.bf16.vlgmr.msrb.gmra.mxu1 %v2843_v0 }
  0x9a   : > { %1209 = vmatmul.bf16.vlgmr.msrb.gmra.mxu2 %v2751_v48  ;;  %v2084_v48 = vor.u32 %v2303_v10, %v2081_v11  ;;  %v401_v10 = vld [vmem:[%s2733_s3 + $0xe0] sm:$0xff]  ;;  %v407_v11 = vld [vmem:[%s2733_s3 + $0x110] sm:$0xff] }
  0x9b   : > { %1238 = vmatmul.bf16.vlgmr.msrb.gmra.mxu3 %v2753_v53  ;;  %v2317_v53 = vld [vmem:[#allocation5 + $0x224] sm:$0xf]  ;;  %v2876_v13 = vpack.c.bf16 %v407_v11, %v401_v10 }
  0x9c   : > { %v2140_v15 = vor.u32 %v2317_v53, %v2137_v14  ;;  %1292 = vmatpush.bf16.msra.mxu1 %v2084_v48  ;;  %v408_v48 = vld [vmem:[%s2733_s3 + $0x118] sm:$0xff]  ;;  %v1397_v14 = vld [vmem:[%s2829_s21 + $0x30] sm:$0xff] }
  0x9d   : > { %v2878_v53 = vpack.c.bf16 %v408_v48, %v402_v12  ;;  %1431 = vperm.xlu0 %2420, %v1397_v14  }
  0x9e   : > { %1322 = vmatpush.bf16.msra.mxu2 %v2140_v15  ;;  %v1398_v15 = vld [vmem:[%s2829_s21 + $0x38] sm:$0xff]  ;;  %s1718_s21 = scalar_lea.sflag [#allocation4], %s2729_s5 }
  0x9f   : > { %1436 = vperm.xlu1 %2421, %v1398_v15  }
  0xa0   : > { %1293 = vmatpush.bf16.msra.mxu1 %v2076_v31 }
  0xa2   : > { %1323 = vmatpush.bf16.msra.mxu2 %v2132_v44 }
  0xa8   : > { %1156 = vmatmul.bf16.gmra.mxu0 %v2861_v35 }
  0xa9   : > { %1185 = vmatmul.bf16.gmra.mxu1 %v2863_v40 }
  0xaa   : > { %1214 = vmatmul.bf16.gmra.mxu2 %v2771_v45  ;;  %v2068_v45 = vor.u32 %v2299_v58, %v2065_v59 }
  0xab   : > { %1243 = vmatmul.bf16.gmra.mxu3 %v2773_v50  ;;  %v2124_v50 = vor.u32 %v2313_v61, %v2121_v62 }
  0xac   : > { %1294 = vmatpush.bf16.msra.mxu1 %v2068_v45 }
  0xad   : > { %1324 = vmatpush.bf16.msra.mxu2 %v2124_v50 }
  0xb0   : > { %1295 = vmatpush.bf16.msra.mxu1 %v2060_v9 }
  0xb8   : > { %1161 = vmatmul.bf16.gmra.mxu0 %v2876_v13 }
  0xb9   : > { %1190 = vmatmul.bf16.gmra.mxu1 %v2878_v53 }
  0xba   : > { %1219 = vmatmul.bf16.gmra.mxu2 %v2791_v36  ;;  %v2901_v36 = vld [vmem:[%s3136_s4] sm:$0x3] }
  0xbb   : > { %1248 = vmatmul.bf16.gmra.mxu3 %v2793_v37  ;;  %v2904_v37 = vperm.slane %v2901_v36, 0 }
  0xc8   : > { %1166 = vmatmul.bf16.gmra.mxu0 %v2890_v24 }
  0xc9   : > { %1195 = vmatmul.bf16.gmra.mxu1 %v2892_v25 }
  0xca   : > { %1224 = vmatmul.bf16.gmra.mxu2 %v2818_v17 }
  0xcb   : > { %1253 = vmatmul.bf16.gmra.mxu3 %v2820_v18 }
  0xd5   : > { %v1036_v26 = vpop.f32.mrf.mxu0 }
  0xd6   : > { %v1037_v27 = vadd.f32 %v1036_v26, %v2904_v37  ;;  %v1065_v28 = vpop.f32.mrf.mxu1 }
  0xd8   : > { %1267 = vmatmul.bf16.vlgmr.msra.gmra.mxu0 %v2755_v54  ;;  %v1066_v29 = vadd.f32 %v1065_v28, %v1037_v27  ;;  %v2954_v26 = vpop.permute.xlu2 %1421 }
  0xd9   : > { %1296 = vmatmul.bf16.vlgmr.msra.gmra.mxu1 %v2757_v57 }
  0xda   : > { %1325 = vmatmul.bf16.vlgmr.msra.gmra.mxu2 %v2841_v63 }
  0xdb   : > { %1354 = vmatmul.bf16.vlgmr.msra.gmra.mxu3 %v2843_v0 }
  0xdd   : > { %v1094_v17 = vpop.f32.mrf.mxu2  ;;  %v1038_v31 = vpop.f32.mrf.mxu0 }
  0xde   : > { %v1095_v18 = vadd.f32 %v1094_v17, %v1066_v29  ;;  %v1123_v30 = vpop.f32.mrf.mxu3  ;;  %v1039_v32 = vadd.f32 %v1038_v31, %v2904_v37  ;;  %v1067_v33 = vpop.f32.mrf.mxu1 }
  0xe0   : > { %v1124_v34 = vadd.f32 %v1123_v30, %v1095_v18  ;;  %v1068_v41 = vadd.f32 %v1067_v33, %v1039_v32 }
  0xe5   : > { %v1096_v42 = vpop.f32.mrf.mxu2  ;;  %v1041_v54 = vpop.f32.mrf.mxu0 }
  0xe6   : > { %v1097_v43 = vadd.f32 %v1096_v42, %v1068_v41  ;;  %v1125_v44 = vpop.f32.mrf.mxu3  ;;  %v1042_v46 = vadd.f32 %v1041_v54, %v2904_v37  ;;  %v1070_v57 = vpop.f32.mrf.mxu1 }
  0xe7   : > { %v2966_v41 = vpop.permute.xlu0 %1406 }
  0xe8   : > { %v2913_v47 = vadd.f32 %v1125_v44, %v1097_v43  ;;  %v1071_v63 = vadd.f32 %v1070_v57, %v1042_v46  ;;  %1272 = vmatmul.bf16.gmra.mxu0 %v2775_v51  ;;  %v2968_v44 = vpop.permute.xlu2 %1426 }
  0xe9   : > { %1301 = vmatmul.bf16.gmra.mxu1 %v2777_v56 }
  0xea   : > { %1330 = vmatmul.bf16.gmra.mxu2 %v2861_v35 }
  0xeb   : > { %1359 = vmatmul.bf16.gmra.mxu3 %v2863_v40 }
  0xed   : > { %v1099_v0 = vpop.f32.mrf.mxu2  ;;  %v1043_v55 = vpop.f32.mrf.mxu0 }
  0xee   : > { %v1100_v49 = vadd.f32 %v1099_v0, %v1071_v63  ;;  %v1128_v52 = vpop.f32.mrf.mxu3  ;;  %v1044_v58 = vadd.f32 %v1043_v55, %v2904_v37  ;;  %v1072_v59 = vpop.f32.mrf.mxu1 }
  0xf0   : > { %v2920_v60 = vadd.f32 %v1128_v52, %v1100_v49  ;;  %v1073_v45 = vadd.f32 %v1072_v59, %v1044_v58 }
  0xf5   : > { %v1101_v61 = vpop.f32.mrf.mxu2  ;;  %v1046_v51 = vpop.f32.mrf.mxu0 }
  0xf6   : > { %v1102_v62 = vadd.f32 %v1101_v61, %v1073_v45  ;;  %v1130_v1 = vpop.f32.mrf.mxu3  ;;  %v1047_v56 = vadd.f32 %v1046_v51, %v2904_v37  ;;  %v1075_v50 = vpop.f32.mrf.mxu1 }
  0xf8   : > { %v2923_v35 = vadd.f32 %v1130_v1, %v1102_v62  ;;  %v1076_v40 = vadd.f32 %v1075_v50, %v1047_v56  ;;  %1277 = vmatmul.bf16.gmra.mxu0 %v2795_v38  ;;  %v2975_v62 = vpop.permute.xlu0 %1411  ;;  %v1602_v1 = vld [vmem:[#allocation7 + $0x78] sm:$0xff]  ;;  %v1601_v50 = vld [vmem:[#allocation7 + $0x70] sm:$0xff] }
  0xf9   : > { %1306 = vmatmul.bf16.gmra.mxu1 %v2797_v39  ;;  %1676 = vmatpush.msrb.mxu0 %v1602_v1 }
  0xfa   : > { %1335 = vmatmul.bf16.gmra.mxu2 %v2876_v13 }
  0xfb   : > { %1364 = vmatmul.bf16.gmra.mxu3 %v2878_v53  ;;  %1677 = vmatpush.msrb.mxu0 %v1601_v50 }
  0xfd   : > { %v1104_v2 = vpop.f32.mrf.mxu2  ;;  %v1048_v5 = vpop.f32.mrf.mxu0 }
  0xfe   : > { %v1105_v3 = vadd.f32 %v1104_v2, %v1076_v40  ;;  %v1133_v4 = vpop.f32.mrf.mxu3  ;;  %v1049_v6 = vadd.f32 %v1048_v5, %v2904_v37  ;;  %v1077_v7 = vpop.f32.mrf.mxu1 }
 0x100   : > { %v2930_v8 = vadd.f32 %v1133_v4, %v1105_v3  ;;  %v1078_v9 = vadd.f32 %v1077_v7, %v1049_v6  ;;  %v2977_v3 = vpop.permute.xlu2 %1554 }
 0x105   : > { %v1106_v10 = vpop.f32.mrf.mxu2  ;;  %v2932_v38 = vpop.f32.mrf.mxu0 }
 0x106   : > { %v1107_v11 = vadd.f32 %v1106_v10, %v1078_v9  ;;  %v1135_v12 = vpop.f32.mrf.mxu3  ;;  %v2934_v39 = vpop.f32.mrf.mxu1  ;;  %v1600_v9 = vld [vmem:[#allocation7 + $0x68] sm:$0xff] }
 0x107   : > { %1678 = vmatpush.msrb.mxu0 %v1600_v9 }
 0x108   : > { %v2936_v48 = vadd.f32 %v1135_v12, %v1107_v11  ;;  %1282 = vmatmul.bf16.gmra.mxu0 %v2822_v19 }
 0x109   : > { %1311 = vmatmul.bf16.gmra.mxu1 %v2824_v20 }
 0x10a   : > { %1340 = vmatmul.bf16.gmra.mxu2 %v2890_v24  ;;  %v2956_v24 = vpop.permute.xlu1 %1401 }
 0x10b   : > { %1369 = vmatmul.bf16.gmra.mxu3 %v2892_v25  ;;  %v2959_v25 = vperm.slane %v2901_v36, 1 }
 0x10d   : > { %v2942_v13 = vpop.f32.mrf.mxu2  ;;  %v2946_v14 = vpop.f32.mrf.mxu0 }
 0x10e   : > { %v2944_v53 = vpop.f32.mrf.mxu3  ;;  %v2948_v15 = vpop.f32.mrf.mxu1 }
 0x115   : > { %v2950_v16 = vpop.f32.mrf.mxu2  ;;  %v1152_v22 = vpop.f32.mrf.mxu0 }
 0x116   : > { %v2952_v21 = vpop.f32.mrf.mxu3  ;;  %v1153_v19 = vadd.f32 %v1152_v22, %v1124_v34  ;;  %v1181_v23 = vpop.f32.mrf.mxu1 }
 0x118   : > { %v1182_v20 = vadd.f32 %v1181_v23, %v1153_v19  ;;  %v1556_v19 = vrot.slane %v2977_v3, 1 }
 0x11a   : > { %v1375_v27 = vmax.f32 %v1182_v20, 0.0  ;;  %v1599_v20 = vld [vmem:[#allocation7 + $0x60] sm:$0xff] }
 0x11b   : > { %1679 = vmatpush.msrb.mxu0 %v1599_v20 }
 0x11c   : > { %v1439_v28 = vmul.f32 %v2956_v24, %v1375_v27 }
 0x11d   : > { %v1210_v29 = vpop.f32.mrf.mxu2  ;;  %v1154_v30 = vpop.f32.mrf.mxu0 }
 0x11e   : > { %v1211_v17 = vadd.f32 %v1210_v29, %v2959_v25  ;;  %v1239_v18 = vpop.f32.mrf.mxu3  ;;  %v1455_v31 = vrot.slane %v1439_v28, 4  ;;  %v1155_v32 = vadd.f32 %v1154_v30, %v2913_v47  ;;  %v1183_v33 = vpop.f32.mrf.mxu1  ;;  %v1598_v30 = vld [vmem:[#allocation7 + $0x58] sm:$0xff] }
 0x11f   : > { %1680 = vmatpush.msrb.mxu0 %v1598_v30 }
 0x120   : > { %v2964_v34 = vadd.f32 %v1239_v18, %v1211_v17  ;;  %v1456_v42 = vadd.f32 %v1455_v31, %v1439_v28  ;;  %v1184_v43 = vadd.f32 %v1183_v33, %v1155_v32  ;;  %v2985_v18 = vpop.permute.xlu1 %1416  ;;  %v1597_v33 = vld [vmem:[#allocation7 + $0x50] sm:$0xff] }
 0x121   : > { %1681 = vmatpush.msrb.mxu0 %v1597_v33 }
 0x122   : > { %v1377_v36 = vmax.f32 %v1184_v43, 0.0  ;;  %v1457_v54 = vrot.slane %v1456_v42, 2 }
 0x124   : > { %v1441_v46 = vmul.f32 %v2966_v41, %v1377_v36  ;;  %v1458_v59 = vadd.f32 %v1457_v54, %v1456_v42 }
 0x125   : > { %v1212_v57 = vpop.f32.mrf.mxu2  ;;  %v1157_v49 = vpop.f32.mrf.mxu0 }
 0x126   : > { %v1213_v63 = vadd.f32 %v1212_v57, %v2959_v25  ;;  %v1241_v0 = vpop.f32.mrf.mxu3  ;;  %v1467_v52 = vrot.slane %v1441_v46, 4  ;;  %v1158_v47 = vadd.f32 %v1157_v49, %v2920_v60  ;;  %v1186_v55 = vpop.f32.mrf.mxu1  ;;  %v1459_v40 = vrot.slane %v1458_v59, 1 }
 0x127   : > { %v1557_v57 = vrot.slane %v2977_v3, 2 }
 0x128   : > { %v2973_v58 = vadd.f32 %v1241_v0, %v1213_v63  ;;  %v1468_v45 = vadd.f32 %v1467_v52, %v1441_v46  ;;  %v1187_v61 = vadd.f32 %v1186_v55, %v1158_v47  ;;  %v1460_v27 = vadd.f32 %v1459_v40, %v1458_v59  ;;  %v1596_v52 = vld [vmem:[#allocation7 + $0x48] sm:$0xff] }
 0x129   : > { %1682 = vmatpush.msrb.mxu0 %v1596_v52 }
 0x12a   : > { %v1469_v51 = vrot.slane %v1468_v45, 2  ;;  %v1379_v56 = vmax.f32 %v1187_v61, 0.0  ;;  %v1571_v42 = vmul.f32 %v2977_v3, %v1460_v27 }
 0x12c   : > { %v1470_v2 = vadd.f32 %v1469_v51, %v1468_v45  ;;  %v1443_v4 = vmul.f32 %v2975_v62, %v1379_v56  ;;  %v1595_v51 = vld [vmem:[#allocation7 + $0x40] sm:$0xff]  ;;  %v1052_v56 = vadd.f32 %v2932_v38, %v2904_v37 }
 0x12d   : > { %v1215_v60 = vpop.f32.mrf.mxu2  ;;  %v1159_v7 = vpop.f32.mrf.mxu0  ;;  %1683 = vmatpush.msrb.mxu0 %v1595_v51 }
 0x12e   : > { %v1216_v5 = vadd.f32 %v1215_v60, %v2959_v25  ;;  %v1244_v6 = vpop.f32.mrf.mxu3  ;;  %v1471_v10 = vrot.slane %v1470_v2, 1  ;;  %v1479_v11 = vrot.slane %v1443_v4, 4  ;;  %v1160_v12 = vadd.f32 %v1159_v7, %v2923_v35  ;;  %v1188_v22 = vpop.f32.mrf.mxu1 }
 0x12f   : > { %v1081_v7 = vadd.f32 %v2934_v39, %v1052_v56  ;;  %v1588_v56 = vld [vmem:[#allocation7 + $0x8] sm:$0xff] }
 0x130   : > { %v2983_v23 = vadd.f32 %v1244_v6, %v1216_v5  ;;  %v1472_v28 = vadd.f32 %v1471_v10, %v1470_v2  ;;  %v1480_v29 = vadd.f32 %v1479_v11, %v1443_v4  ;;  %v1189_v17 = vadd.f32 %v1188_v22, %v1160_v12  ;;  %v1594_v4 = vld [vmem:[#allocation7 + $0x38] sm:$0xff]  ;;  %v1593_v6 = vld [vmem:[#allocation7 + $0x30] sm:$0xff] }
 0x131   : > { %1684 = vmatpush.msrb.mxu0 %v1594_v4  ;;  %v1558_v12 = vrot.slane %v2977_v3, 3  ;;  %v1110_v33 = vadd.f32 %v2942_v13, %v1081_v7 }
 0x132   : > { %v1481_v31 = vrot.slane %v1480_v29, 2  ;;  %v1381_v32 = vmax.f32 %v1189_v17, 0.0  ;;  %v1573_v35 = vmul.f32 %v1556_v19, %v1472_v28  ;;  %v1592_v28 = vld [vmem:[#allocation7 + $0x28] sm:$0xff] }
 0x133   : > { %1685 = vmatpush.msrb.mxu0 %v1593_v6  ;;  %v1139_v52 = vadd.f32 %v2944_v53, %v1110_v33 }
 0x134   : > { %v1482_v43 = vadd.f32 %v1481_v31, %v1480_v29  ;;  %v1445_v36 = vmul.f32 %v2985_v18, %v1381_v32  ;;  %v1639_v46 = vrot.slane %v1573_v35, 7  ;;  %v1591_v35 = vld [vmem:[#allocation7 + $0x20] sm:$0xff] }
 0x135   : > { %v1217_v54 = vpop.f32.mrf.mxu2  ;;  %v1162_v49 = vpop.f32.mrf.mxu0  ;;  %1686 = vmatpush.msrb.mxu0 %v1592_v28 }
 0x136   : > { %v1218_v63 = vadd.f32 %v1217_v54, %v2959_v25  ;;  %v1246_v0 = vpop.f32.mrf.mxu3  ;;  %v1483_v47 = vrot.slane %v1482_v43, 1  ;;  %v1491_v55 = vrot.slane %v1445_v36, 4  ;;  %v1163_v59 = vadd.f32 %v1162_v49, %v2930_v8  ;;  %v1191_v45 = vpop.f32.mrf.mxu1  ;;  %v1589_v49 = vld [vmem:[#allocation7 + $0x10] sm:$0xff] }
 0x137   : > { %v1641_v61 = vsel %vm1640_vm0, %v1639_v46, %v1571_v42  ;;  %1687 = vmatpush.msrb.mxu0 %v1591_v35  ;;  %v1054_v54 = vadd.f32 %v2946_v14, %v2904_v37  ;;  %v1590_v46 = vld [vmem:[#allocation7 + $0x18] sm:$0xff]  ;;  %v1559_v37 = vrot.slane %v2977_v3, 4 }
 0x138   : > { %v2995_v1 = vadd.f32 %v1246_v0, %v1218_v63  ;;  %v1484_v50 = vadd.f32 %v1483_v47, %v1482_v43  ;;  %v1492_v40 = vadd.f32 %v1491_v55, %v1445_v36  ;;  %v1192_v2 = vadd.f32 %v1191_v45, %v1163_v59 }
 0x139   : > { %1688 = vmatpush.msrb.mxu0 %v1590_v46  ;;  %v1083_v45 = vadd.f32 %v2948_v15, %v1054_v54  ;;  %v3035_v54 = vpop.permute.xlu1 %1436 }
 0x13a   : > { %v1575_v60 = vmul.f32 %v1557_v57, %v1484_v50  ;;  %v1493_v5 = vrot.slane %v1492_v40, 2  ;;  %v1383_v8 = vmax.f32 %v1192_v2, 0.0 }
 0x13b   : > { %1689 = vmatpush.msrb.mxu0 %v1589_v49 }
 0x13c   : > { %v1642_v9 = vrot.slane %v1575_v60, 6  ;;  %v1494_v10 = vadd.f32 %v1493_v5, %v1492_v40  ;;  %v1447_v11 = vmul.f32 %v2954_v26, %v1383_v8  ;;  %v1587_v5 = vld [vmem:[#allocation7] sm:$0xff]  ;;  %v1112_v8 = vadd.f32 %v2950_v16, %v1083_v45 }
 0x13d   : > { %v1220_v38 = vpop.f32.mrf.mxu2  ;;  %v1164_v27 = vpop.f32.mrf.mxu0  ;;  %1690 = vmatpush.msrb.mxu0 %v1588_v56  ;;  %v1560_v16 = vrot.slane %v2977_v3, 5 }
 0x13e   : > { %v1221_v22 = vadd.f32 %v1220_v38, %v2959_v25  ;;  %v1249_v20 = vpop.f32.mrf.mxu3  ;;  %v1495_v29 = vrot.slane %v1494_v10, 1  ;;  %v1503_v17 = vrot.slane %v1447_v11, 4  ;;  %v1165_v30 = vadd.f32 %v1164_v27, %v2936_v48  ;;  %v1193_v31 = vpop.f32.mrf.mxu1 }
 0x13f   : > { %v1644_v39 = vsel %vm1643_vm1, %v1642_v9, %v1641_v61  ;;  %1691 = vmatpush.msrb.mxu0 %v1587_v5  ;;  %v3023_v9 = vpop.permute.xlu0 %1431 }
 0x140   : > { %v3007_v32 = vadd.f32 %v1249_v20, %v1221_v22  ;;  %v1496_v42 = vadd.f32 %v1495_v29, %v1494_v10  ;;  %v1504_v43 = vadd.f32 %v1503_v17, %v1447_v11  ;;  %v1194_v36 = vadd.f32 %v1193_v31, %v1165_v30 }
 0x141   : > { %v1141_v22 = vadd.f32 %v2952_v21, %v1112_v8 }
 0x142   : > { %v1577_v48 = vmul.f32 %v1558_v12, %v1496_v42  ;;  %v1505_v63 = vrot.slane %v1504_v43, 2  ;;  %v1385_v0 = vmax.f32 %v1194_v36, 0.0 }
 0x144   : > { %v1645_v47 = vrot.slane %v1577_v48, 5  ;;  %v1506_v13 = vadd.f32 %v1505_v63, %v1504_v43  ;;  %v1449_v55 = vmul.f32 %v2968_v44, %v1385_v0 }
 0x145   : > { %v1222_v59 = vpop.f32.mrf.mxu2  ;;  %v1167_v51 = vpop.f32.mrf.mxu0 }
 0x146   : > { %v1223_v14 = vadd.f32 %v1222_v59, %v2959_v25  ;;  %v1251_v61 = vpop.f32.mrf.mxu3  ;;  %v1507_v50 = vrot.slane %v1506_v13, 1  ;;  %v1515_v40 = vrot.slane %v1449_v55, 4  ;;  %v1168_v2 = vadd.f32 %v1167_v51, %v1139_v52  ;;  %v1196_v4 = vpop.f32.mrf.mxu1 }
 0x147   : > { %v1647_v53 = vsel %vm1646_vm2, %v1645_v47, %v1644_v39 }
 0x148   : > { %v3020_v60 = vadd.f32 %v1251_v61, %v1223_v14  ;;  %v1508_v15 = vadd.f32 %v1507_v50, %v1506_v13  ;;  %v1516_v6 = vadd.f32 %v1515_v40, %v1449_v55  ;;  %v1197_v7 = vadd.f32 %v1196_v4, %v1168_v2 }
 0x149   : > { %v1561_v50 = vrot.slane %v2977_v3, 6 }
 0x14a   : > { %v1579_v10 = vmul.f32 %v1559_v37, %v1508_v15  ;;  %v1517_v11 = vrot.slane %v1516_v6, 2  ;;  %v1387_v38 = vmax.f32 %v1197_v7, 0.0 }
 0x14c   : > { %v1648_v20 = vrot.slane %v1579_v10, 4  ;;  %v1518_v27 = vadd.f32 %v1517_v11, %v1516_v6  ;;  %v1451_v28 = vmul.f32 %v3023_v9, %v1387_v38  ;;  %v1562_v10 = vrot.slane %v2977_v3, 7 }
 0x14d   : > { %v3029_v29 = vpop.f32.mrf.mxu2  ;;  %v1169_v30 = vpop.f32.mrf.mxu0 }
 0x14e   : > { %v3032_v17 = vpop.f32.mrf.mxu3  ;;  %v1519_v31 = vrot.slane %v1518_v27, 1  ;;  %v1527_v39 = vrot.slane %v1451_v28, 4  ;;  %v1170_v35 = vadd.f32 %v1169_v30, %v1141_v22  ;;  %v1198_v33 = vpop.f32.mrf.mxu1  ;;  %v1650_v42 = vsel %vm1649_vm3, %v1648_v20, %v1647_v53 }
 0x150   : > { %v1520_v43 = vadd.f32 %v1519_v31, %v1518_v27  ;;  %v1528_v36 = vadd.f32 %v1527_v39, %v1451_v28  ;;  %v1199_v21 = vadd.f32 %v1198_v33, %v1170_v35 }
 0x152   : > { %v1581_v46 = vmul.f32 %v1560_v16, %v1520_v43  ;;  %v1529_v48 = vrot.slane %v1528_v36, 2  ;;  %v1389_v63 = vmax.f32 %v1199_v21, 0.0 }
 0x154   : > { %v1651_v0 = vrot.slane %v1581_v46, 3  ;;  %v1530_v49 = vadd.f32 %v1529_v48, %v1528_v36  ;;  %v1453_v52 = vmul.f32 %v3035_v54, %v1389_v63  ;;  %v1617_v48 = vld [vmem:[#allocation7 + $0xf0] sm:$0xff] }
 0x155   : > { %v3040_v47 = vpop.f32.mrf.mxu2  ;;  %v1268_v55 = vpop.f32.mrf.mxu0 }
 0x156   : > { %v3042_v13 = vpop.f32.mrf.mxu3  ;;  %v1531_v59 = vrot.slane %v1530_v49, 1  ;;  %v1539_v45 = vrot.slane %v1453_v52, 4  ;;  %v1297_v14 = vpop.f32.mrf.mxu1  ;;  %v1653_v61 = vsel %vm1652_vm4, %v1651_v0, %v1650_v42  ;;  %v1269_v51 = vadd.f32 %v1268_v55, %v2964_v34 }
 0x158   : > { %v1540_v56 = vadd.f32 %v1539_v45, %v1453_v52  ;;  %v1532_v40 = vadd.f32 %v1531_v59, %v1530_v49  ;;  %v1298_v4 = vadd.f32 %v1297_v14, %v1269_v51  ;;  %v1616_v51 = vld [vmem:[#allocation7 + $0xe8] sm:$0xff] }
 0x15a   : > { %v1541_v2 = vrot.slane %v1540_v56, 2  ;;  %v1583_v8 = vmul.f32 %v1561_v50, %v1532_v40 }
 0x15c   : > { %v1542_v53 = vadd.f32 %v1541_v2, %v1540_v56  ;;  %v1654_v27 = vrot.slane %v1583_v8, 2  ;;  %v1615_v56 = vld [vmem:[#allocation7 + $0xe0] sm:$0xff] }
 0x15d   : > { %v1326_v5 = vpop.f32.mrf.mxu2  ;;  %v1270_v7 = vpop.f32.mrf.mxu0 }
 0x15e   : > { %v1327_v15 = vadd.f32 %v1326_v5, %v1298_v4  ;;  %v1355_v6 = vpop.f32.mrf.mxu3  ;;  %v1543_v11 = vrot.slane %v1542_v53, 1  ;;  %v1299_v38 = vpop.f32.mrf.mxu1  ;;  %v1271_v34 = vadd.f32 %v1270_v7, %v2973_v58  ;;  %v1656_v46 = vsel %vm1655_vm5, %v1654_v27, %v1653_v61  ;;  %v1618_v58 = vld [vmem:[#allocation7 + $0xf8] sm:$0xff]  ;;  %v1613_v27 = vld [vmem:[#allocation7 + $0xd0] sm:$0xff] }
 0x15f   : > { %1696 = vmatpush.msrb.mxu1 %v1618_v58 }
 0x160   : > { %v1356_v22 = vadd.f32 %v1355_v6, %v1327_v15  ;;  %v1544_v20 = vadd.f32 %v1543_v11, %v1542_v53  ;;  %v1300_v39 = vadd.f32 %v1299_v38, %v1271_v34 }
 0x161   : > { %1697 = vmatpush.msrb.mxu1 %v1617_v48 }
 0x162   : > { %v1376_v28 = vmax.f32 %v1356_v22, 0.0  ;;  %v1585_v30 = vmul.f32 %v1562_v10, %v1544_v20  ;;  %v1614_v20 = vld [vmem:[#allocation7 + $0xd8] sm:$0xff] }
 0x163   : > { %1698 = vmatpush.msrb.mxu1 %v1616_v51 }
 0x164   : > { %v1440_v31 = vmul.f32 %v2956_v24, %v1376_v28  ;;  %v1657_v35 = vrot.slane %v1585_v30, 1 }
 0x165   : > { %v1328_v33 = vpop.f32.mrf.mxu2  ;;  %v1273_v21 = vpop.f32.mrf.mxu0  ;;  %1699 = vmatpush.msrb.mxu1 %v1615_v56 }
 0x166   : > { %v1461_v42 = vrot.slane %v1440_v31, 4  ;;  %v1329_v43 = vadd.f32 %v1328_v33, %v1300_v39  ;;  %v1357_v36 = vpop.f32.mrf.mxu3  ;;  %v1302_v63 = vpop.f32.mrf.mxu1  ;;  %v1659_v0 = vsel %vm1658_vm6, %v1657_v35, %v1656_v46  ;;  %v1274_v24 = vadd.f32 %v1273_v21, %v2983_v23 }
 0x167   : > { %1692 = vmatmul.f32.vlgmr.msrb.gmra.mxu0 %v1659_v0  ;;  %1700 = vmatpush.msrb.mxu1 %v1614_v20 }
 0x168   : > { %v1462_v49 = vadd.f32 %v1461_v42, %v1440_v31  ;;  %v1358_v52 = vadd.f32 %v1357_v36, %v1329_v43  ;;  %v1303_v14 = vadd.f32 %v1302_v63, %v1274_v24 }
 0x169   : > { %1701 = vmatpush.msrb.mxu1 %v1613_v27 }
 0x16a   : > { %v1378_v55 = vmax.f32 %v1358_v52, 0.0  ;;  %v1463_v59 = vrot.slane %v1462_v49, 2 }
 0x16c   : > { %v1442_v45 = vmul.f32 %v2966_v41, %v1378_v55  ;;  %v1464_v5 = vadd.f32 %v1463_v59, %v1462_v49  ;;  %v1612_v55 = vld [vmem:[#allocation7 + $0xc8] sm:$0xff]  ;;  %v1611_v59 = vld [vmem:[#allocation7 + $0xc0] sm:$0xff] }
 0x16d   : > { %v1331_v61 = vpop.f32.mrf.mxu2  ;;  %v1275_v53 = vpop.f32.mrf.mxu0  ;;  %1702 = vmatpush.msrb.mxu1 %v1612_v55 }
 0x16e   : > { %v1473_v40 = vrot.slane %v1442_v45, 4  ;;  %v1332_v2 = vadd.f32 %v1331_v61, %v1303_v14  ;;  %v1360_v4 = vpop.f32.mrf.mxu3  ;;  %v1304_v8 = vpop.f32.mrf.mxu1  ;;  %v1276_v6 = vadd.f32 %v1275_v53, %v2995_v1  ;;  %v1465_v38 = vrot.slane %v1464_v5, 1 }
 0x16f   : > { %1703 = vmatpush.msrb.mxu1 %v1611_v59 }
 0x170   : > { %v1474_v15 = vadd.f32 %v1473_v40, %v1442_v45  ;;  %v1361_v23 = vadd.f32 %v1360_v4, %v1332_v2  ;;  %v1305_v34 = vadd.f32 %v1304_v8, %v1276_v6  ;;  %v1466_v42 = vadd.f32 %v1465_v38, %v1464_v5 }
 0x171   : > { %v1226_v8 = vadd.f32 %v3029_v29, %v2959_v25 }
 0x172   : > { %v1475_v7 = vrot.slane %v1474_v15, 2  ;;  %v1380_v11 = vmax.f32 %v1361_v23, 0.0  ;;  %v1572_v63 = vmul.f32 %v2977_v3, %v1466_v42 }
 0x174   : > { %v1476_v41 = vadd.f32 %v1475_v7, %v1474_v15  ;;  %v1444_v22 = vmul.f32 %v2975_v62, %v1380_v11  ;;  %v1609_v7 = vld [vmem:[#allocation7 + $0xb0] sm:$0xff] }
 0x175   : > { %v1333_v28 = vpop.f32.mrf.mxu2  ;;  %v1278_v33 = vpop.f32.mrf.mxu0 }
 0x176   : > { %v1477_v30 = vrot.slane %v1476_v41, 1  ;;  %v1485_v31 = vrot.slane %v1444_v22, 4  ;;  %v1334_v39 = vadd.f32 %v1333_v28, %v1305_v34  ;;  %v1362_v35 = vpop.f32.mrf.mxu3  ;;  %v1307_v43 = vpop.f32.mrf.mxu1  ;;  %v1279_v46 = vadd.f32 %v1278_v33, %v3007_v32  ;;  %v1608_v34 = vld [vmem:[#allocation7 + $0xa8] sm:$0xff] }
 0x178   : > { %v1478_v1 = vadd.f32 %v1477_v30, %v1476_v41  ;;  %v1486_v36 = vadd.f32 %v1485_v31, %v1444_v22  ;;  %v1363_v21 = vadd.f32 %v1362_v35, %v1334_v39  ;;  %v1308_v24 = vadd.f32 %v1307_v43, %v1279_v46  ;;  %v1607_v39 = vld [vmem:[#allocation7 + $0xa0] sm:$0xff] }
 0x17a   : > { %v1574_v62 = vmul.f32 %v1556_v19, %v1478_v1  ;;  %v1487_v58 = vrot.slane %v1486_v36, 2  ;;  %v1382_v48 = vmax.f32 %v1363_v21, 0.0  ;;  %v1605_v1 = vld [vmem:[#allocation7 + $0x90] sm:$0xff] }
 0x17c   : > { %v1660_v0 = vrot.slane %v1574_v62, 7  ;;  %v1488_v49 = vadd.f32 %v1487_v58, %v1486_v36  ;;  %v1446_v52 = vmul.f32 %v2985_v18, %v1382_v48  ;;  %v1610_v18 = vld [vmem:[#allocation7 + $0xb8] sm:$0xff]  ;;  %v1604_v58 = vld [vmem:[#allocation7 + $0x88] sm:$0xff] }
 0x17d   : > { %v1336_v45 = vpop.f32.mrf.mxu2  ;;  %v1280_v19 = vpop.f32.mrf.mxu0  ;;  %1704 = vmatpush.msrb.mxu1 %v1610_v18 }
 0x17e   : > { %v1661_v14 = vsel %vm1640_vm0, %v1660_v0, %v1572_v63  ;;  %v1489_v51 = vrot.slane %v1488_v49, 1  ;;  %v1497_v32 = vrot.slane %v1446_v52, 4  ;;  %v1337_v56 = vadd.f32 %v1336_v45, %v1308_v24  ;;  %v1365_v61 = vpop.f32.mrf.mxu3  ;;  %v1309_v40 = vpop.f32.mrf.mxu1 }
 0x17f   : > { %v1281_v5 = vadd.f32 %v1280_v19, %v3020_v60  ;;  %1705 = vmatpush.msrb.mxu1 %v1609_v7  ;;  %v1255_v60 = vadd.f32 %v3032_v17, %v1226_v8  ;;  %v1228_v17 = vadd.f32 %v3040_v47, %v2959_v25 }
 0x180   : > { %v1490_v2 = vadd.f32 %v1489_v51, %v1488_v49  ;;  %v1498_v4 = vadd.f32 %v1497_v32, %v1446_v52  ;;  %v1366_v53 = vadd.f32 %v1365_v61, %v1337_v56  ;;  %v1603_v52 = vld [vmem:[#allocation7 + $0x80] sm:$0xff] }
 0x181   : > { %v1310_v22 = vadd.f32 %v1309_v40, %v1281_v5  ;;  %1706 = vmatpush.msrb.mxu1 %v1608_v34  ;;  %v1257_v24 = vadd.f32 %v3042_v13, %v1228_v17  ;;  %v2423_v17 = vld [vmem:[%s3138_s6] ss:$0 sm:$0xff] }
 0x182   : > { %v1576_v15 = vmul.f32 %v1557_v57, %v1490_v2  ;;  %v1499_v23 = vrot.slane %v1498_v4, 2  ;;  %v1384_v6 = vmax.f32 %v1366_v53, 0.0 }
 0x183   : > { %1707 = vmatpush.msrb.mxu1 %v1607_v39 }
 0x184   : > { %v1662_v11 = vrot.slane %v1576_v15, 6  ;;  %v1500_v38 = vadd.f32 %v1499_v23, %v1498_v4  ;;  %v1448_v41 = vmul.f32 %v2954_v26, %v1384_v6  ;;  %v1606_v26 = vld [vmem:[#allocation7 + $0x98] sm:$0xff] }
 0x185   : > { %v1338_v20 = vpop.f32.mrf.mxu2  ;;  %v1283_v31 = vpop.f32.mrf.mxu0  ;;  %1708 = vmatpush.msrb.mxu1 %v1606_v26 }
 0x186   : > { %v1663_v29 = vsel %vm1643_vm1, %v1662_v11, %v1661_v14  ;;  %v1501_v27 = vrot.slane %v1500_v38, 1  ;;  %v1509_v28 = vrot.slane %v1448_v41, 4  ;;  %v1339_v30 = vadd.f32 %v1338_v20, %v1310_v22  ;;  %v1367_v57 = vpop.f32.mrf.mxu3  ;;  %v1312_v36 = vpop.f32.mrf.mxu1 }
 0x187   : > { %v1284_v43 = vadd.f32 %v1283_v31, %v1255_v60  ;;  %1709 = vmatpush.msrb.mxu1 %v1605_v1 }
 0x188   : > { %v1502_v35 = vadd.f32 %v1501_v27, %v1500_v38  ;;  %v1510_v33 = vadd.f32 %v1509_v28, %v1448_v41  ;;  %v1368_v42 = vadd.f32 %v1367_v57, %v1339_v30 }
 0x189   : > { %v1313_v49 = vadd.f32 %v1312_v36, %v1284_v43  ;;  %1710 = vmatpush.msrb.mxu1 %v1604_v58 }
 0x18a   : > { %v1578_v21 = vmul.f32 %v1558_v12, %v1502_v35  ;;  %v1511_v46 = vrot.slane %v1510_v33, 2  ;;  %v1386_v62 = vmax.f32 %v1368_v42, 0.0 }
 0x18b   : > { %1711 = vmatpush.msrb.mxu1 %v1603_v52 }
 0x18c   : > { %v1664_v48 = vrot.slane %v1578_v21, 5  ;;  %v1512_v63 = vadd.f32 %v1511_v46, %v1510_v33  ;;  %v1450_v0 = vmul.f32 %v2968_v44, %v1386_v62 }
 0x18d   : > { %v1341_v55 = vpop.f32.mrf.mxu2  ;;  %v1285_v14 = vpop.f32.mrf.mxu0 }
 0x18e   : > { %v1513_v25 = vrot.slane %v1512_v63, 1  ;;  %v1521_v47 = vrot.slane %v1450_v0, 4  ;;  %v1342_v59 = vadd.f32 %v1341_v55, %v1313_v49  ;;  %v1370_v45 = vpop.f32.mrf.mxu3  ;;  %v1665_v12 = vsel %vm1646_vm2, %v1664_v48, %v1663_v29  ;;  %v1314_v13 = vpop.f32.mrf.mxu1 }
 0x18f   : > { %v1286_v61 = vadd.f32 %v1285_v14, %v1257_v24 }
 0x190   : > { %v1514_v51 = vadd.f32 %v1513_v25, %v1512_v63  ;;  %v1522_v32 = vadd.f32 %v1521_v47, %v1450_v0  ;;  %v1371_v56 = vadd.f32 %v1370_v45, %v1342_v59 }
 0x191   : > { %v1315_v5 = vadd.f32 %v1314_v13, %v1286_v61 }
 0x192   : > { %v1580_v44 = vmul.f32 %v1559_v37, %v1514_v51  ;;  %v1523_v19 = vrot.slane %v1522_v32, 2  ;;  %v1388_v40 = vmax.f32 %v1371_v56, 0.0 }
 0x194   : > { %v1666_v2 = vrot.slane %v1580_v44, 4  ;;  %v1524_v4 = vadd.f32 %v1523_v19, %v1522_v32  ;;  %v1452_v53 = vmul.f32 %v3023_v9, %v1388_v40 }
 0x195   : > { %v1343_v18 = vpop.f32.mrf.mxu2 }
 0x196   : > { %v1525_v8 = vrot.slane %v1524_v4, 1  ;;  %v1533_v15 = vrot.slane %v1452_v53, 4  ;;  %v1344_v23 = vadd.f32 %v1343_v18, %v1315_v5  ;;  %v1667_v6 = vsel %vm1649_vm3, %v1666_v2, %v1665_v12  ;;  %v1372_v7 = vpop.f32.mrf.mxu3 }
 0x198   : > { %v1526_v11 = vadd.f32 %v1525_v8, %v1524_v4  ;;  %v1534_v38 = vadd.f32 %v1533_v15, %v1452_v53  ;;  %v1373_v41 = vadd.f32 %v1372_v7, %v1344_v23 }
 0x19a   : > { %v1582_v37 = vmul.f32 %v1560_v16, %v1526_v11  ;;  %v1535_v22 = vrot.slane %v1534_v38, 2  ;;  %v1390_v34 = vmax.f32 %v1373_v41, 0.0 }
 0x19c   : > { %v1668_v60 = vrot.slane %v1582_v37, 3  ;;  %v1536_v20 = vadd.f32 %v1535_v22, %v1534_v38  ;;  %v1454_v9 = vmul.f32 %v3035_v54, %v1390_v34 }
 0x19e   : > { %v1537_v29 = vrot.slane %v1536_v20, 1  ;;  %v1545_v27 = vrot.slane %v1454_v9, 4  ;;  %v1669_v28 = vsel %vm1652_vm4, %v1668_v60, %v1667_v6 }
 0x1a0   : > { %v1546_v30 = vadd.f32 %v1545_v27, %v1454_v9  ;;  %v1538_v57 = vadd.f32 %v1537_v29, %v1536_v20 }
 0x1a2   : > { %v1547_v31 = vrot.slane %v1546_v30, 2  ;;  %v1584_v35 = vmul.f32 %v1561_v50, %v1538_v57 }
 0x1a4   : > { %v1548_v39 = vadd.f32 %v1547_v31, %v1546_v30  ;;  %v1670_v42 = vrot.slane %v1584_v35, 2 }
 0x1a6   : > { %v1549_v16 = vrot.slane %v1548_v39, 1  ;;  %v1671_v26 = vsel %vm1655_vm5, %v1670_v42, %v1669_v28 }
 0x1a8   : > { %v1550_v33 = vadd.f32 %v1549_v16, %v1548_v39 }
 0x1aa   : > { %v1586_v43 = vmul.f32 %v1562_v10, %v1550_v33 }
 0x1ac   : > { %v1672_v54 = vrot.slane %v1586_v43, 1 }
 0x1ae   : > { %v1673_v1 = vsel %vm1658_vm6, %v1672_v54, %v1671_v26 }
 0x1af   : > { %1712 = vmatmul.f32.vlgmr.msrb.gmra.mxu1 %v1673_v1 }
 0x1e4   : > { %v1693_v50 = vpop.f32.mrf.mxu0 }
 0x1e5   : > { %v1694_v3 = vadd.f32 %v2423_v17, %v1693_v50 }
 0x22c   : > { %v1713_v10 = vpop.f32.mrf.mxu1 }
 0x22d   : > { %v1714_v36 = vadd.f32 %v1713_v10, %v1694_v3 }
 0x22f   : > { %1716 = vst [vmem:[%s361_s15] sm:$0xff] %v1714_v36 }
 0x230   : > { %2541 = shalt.err (!%p2538_p13)
}
 0x231   : > { %2358 = dma.vmem_to_hbm [thread:$0]  (%p2699_p3), %s1731_s19, 128, %s1733_s20, %s1718_s21  }
 0x232 PF: > { %s1744_s5 = sand.u32 1, %s2572_s24   ;;  %p3150_p0 = scmp.ge.s32.totalorder %s2584_s27, 2 }
 0x233   : > { %s1745_s11 = scalar_lea.sflag [#allocation4], %s1744_s5 }
 0x234   : > { %p2372_p5 = pnand %p3150_p0, %p2668_p6 }
 0x236   : > { %p2373_p7 = pneg %p2372_p5 }
 0x238   : > { %2567 = dma.done.wait (%p2373_p7), %s1745_s11, 128  }
 0x239   : > { %2569 = vsyncadd (%p2373_p7), %s1745_s11, 4294967168  ;;  %s3151_s13 = sld [smem:[#allocation12_spill]]  ;;  %p21_p1 = scmp.ge.s32.totalorder %s2689_s22, 4  }
 0x23a   : > { %s3152_s24 = smov %s2576_s25  ;;  %s3153_s25 = smov %s2580_s26 }
 0x23b   : > { %s3155_s27 = smov %s2689_s22  ;;  %23 = sbr.rel (!%p21_p1) target bundleno = 9 (0x9), region = 107 }
 0x23f   : > { %s3154_s26 = smov %s3151_s13 }
 0x240   :  { %1751 = vsyncpa [#allocation3], 1 }
 0x241   :  { %1753 = vsyncpa [#allocation3 + $0x1], 1 }
 0x242   :  { %1754 = vsyncpa [#allocation6], 1 }
 0x243   :  { %1755 = vsyncpa [#allocation4], 1 }
 0x244   :  { %1757 = vsyncpa [#allocation4 + $0x1], 1 }

</bundles_post_ra>
